<compile_context>
chip_gen: v6e
topology: v6e:2x2x1
jax: 0.10.0
libtpu: 0.0.40
codegen_flags: <defaults>
</compile_context>

<pallas_src>
import functools
import math

import jax
import jax.numpy as jnp
from jax.experimental import pallas as pl
from jax.experimental.pallas import tpu as pltpu


_GELU_C = math.sqrt(2.0 / math.pi)
_VMEM_BUDGET = 40 * 1024 * 1024   # target working set (v7x-safe: 64 MiB / TC)


def _gelu(x):
    # BERT/GPT tanh-approximation GELU (matches the torch.jit.script gelu).
    return 0.5 * x * (1.0 + jnp.tanh(_GELU_C * (x + 0.044715 * x * x * x)))


def _layernorm(x, gamma, beta, n_real=None, eps=1e-5):
    # Single-pass mean / sum-of-squares: halves the XLU cross-lane reductions
    # per LayerNorm.  `n_real` lets the caller normalize over only the first
    # n_real (non-padded) features when the lane axis is zero-padded
    # (padded lanes contribute 0 to both sums).
    n = x.shape[-1] if n_real is None else n_real
    s = jnp.sum(x, axis=-1, keepdims=True)
    s2 = jnp.sum(x * x, axis=-1, keepdims=True)
    mu = s / n
    var = jnp.maximum(s2 / n - mu * mu, 0.0)
    return (x - mu) * jax.lax.rsqrt(var + eps) * gamma + beta


def _round_up(a, m):
    return ((a + m - 1) // m) * m


def _pad_last(a, new_last):
    pad = new_last - a.shape[-1]
    if pad == 0:
        return a
    return jnp.pad(a, [(0, 0)] * (a.ndim - 1) + [(0, pad)])


def frame_embed_kernel(x_ref,
                       wu_ref, w1_ref, v1_ref, w2_ref, v2_ref,
                       w3_ref, v3_ref, w4_ref, v4_ref,
                       o_ref, *, e_real):
    x = x_ref[...].astype(jnp.bfloat16)          # bf16 operand for the MXU

    v1 = v1_ref[...]   # rows: [b1, g1, be1]
    v2 = v2_ref[...]   # rows: [b2, g2, be2]
    v3 = v3_ref[...]   # rows: [b3, g3, be3]
    v4 = v4_ref[...]   # rows: [bu, b4, g4, be4]  (padded to e_pad lanes)

    # proj branch: 4x (Linear -> LayerNorm -> GELU), last layer LN only.
    h = jnp.dot(x, w1_ref[...], preferred_element_type=jnp.float32) + v1[0:1, :]
    h = _gelu(_layernorm(h, v1[1:2, :], v1[2:3, :]))
    # TODO(synk): nn.Dropout is identity at inference; no RNG masking implemented.
    h = jnp.dot(h.astype(jnp.bfloat16), w2_ref[...],
                preferred_element_type=jnp.float32) + v2[0:1, :]
    h = _gelu(_layernorm(h, v2[1:2, :], v2[2:3, :]))
    h = jnp.dot(h.astype(jnp.bfloat16), w3_ref[...],
                preferred_element_type=jnp.float32) + v3[0:1, :]
    h = _gelu(_layernorm(h, v3[1:2, :], v3[2:3, :]))
    h = jnp.dot(h.astype(jnp.bfloat16), w4_ref[...],
                preferred_element_type=jnp.float32) + v4[1:2, :]
    # final LN over the real embed_dim only; padded gamma/beta are zero so
    # padded output lanes are exactly 0.
    h = _layernorm(h, v4[2:3, :], v4[3:4, :], n_real=e_real)

    # upsample branch computed last: only the small (tm, f) bf16 x stays live
    # across the proj chain instead of a (tm, e_pad) f32 temporary.
    up = jnp.dot(x, wu_ref[...], preferred_element_type=jnp.float32) + v4[0:1, :]

    o_ref[...] = (up + h).astype(o_ref.dtype)


def frame_embed(x, params, *, tm=None):
    """x: (b, t, f) -> (b, t, embed_dim). params: dict of weights (see init_params)."""
    b, t, f = x.shape
    n = b * t
    e = params["wu"].shape[1]
    e_pad = _round_up(e, 128)            # lane-dense output stores

    # --- host-side parameter packing: bf16 weights, padded output axis,
    #     per-layer bias/gamma/beta slabs (4 DMAs instead of 14) -------------
    wdt = jnp.bfloat16
    f32 = jnp.float32
    wu = _pad_last(params["wu"].astype(wdt), e_pad)
    w1 = params["w1"].astype(wdt)
    w2 = params["w2"].astype(wdt)
    w3 = params["w3"].astype(wdt)
    w4 = _pad_last(params["w4"].astype(wdt), e_pad)

    v1 = jnp.stack([params["b1"], params["g1"], params["be1"]]).astype(f32)
    v2 = jnp.stack([params["b2"], params["g2"], params["be2"]]).astype(f32)
    v3 = jnp.stack([params["b3"], params["g3"], params["be3"]]).astype(f32)
    v4 = jnp.stack([_pad_last(params["bu"].astype(f32), e_pad),
                    _pad_last(params["b4"].astype(f32), e_pad),
                    _pad_last(params["g4"].astype(f32), e_pad),   # zero-padded gamma
                    _pad_last(params["be4"].astype(f32), e_pad)])

    weights = [wu, w1, w2, w3, w4]
    vecs = [v1, v2, v3, v4]
    ordered = [wu, w1, v1, w2, v2, w3, v3, w4, v4]

    def vmem_estimate(row_tile):
        # conservative: assume double-buffered parameters
        wb = sum(a.size * a.dtype.itemsize for a in weights) * 2
        vb = sum(_round_up(a.shape[0], 8) * a.shape[1] * 4 for a in vecs) * 2
        io = 2 * row_tile * f * x.dtype.itemsize + 2 * row_tile * e_pad * x.dtype.itemsize
        max_w = max([f] + [a.shape[1] for a in weights])
        act = 6 * row_tile * max_w * 4          # live f32 temporaries
        return wb + vb + io + act + (4 << 20)

    # --- row tiling: big tiles amortize per-step overhead; shrink if the
    #     working set would overflow the VMEM budget -------------------------
    if tm is None:
        tm = 512 if n >= 512 else _round_up(n, 8)
        while tm > 128 and vmem_estimate(tm) > _VMEM_BUDGET:
            tm //= 2
    else:
        tm = _round_up(tm, 8)
    n_pad = _round_up(n, tm)

    x2 = x.reshape(n, f)
    if n_pad != n:
        x2 = jnp.pad(x2, ((0, n_pad - n), (0, 0)))

    vmem_limit = int(min(max(vmem_estimate(tm), 32 << 20), 128 << 20))

    def build(weight_pipeline_mode):
        def invariant_spec(arr):
            nd = arr.ndim
            if weight_pipeline_mode is None:
                return pl.BlockSpec(arr.shape, lambda i, _nd=nd: (0,) * _nd)
            return pl.BlockSpec(arr.shape, lambda i, _nd=nd: (0,) * _nd,
                                pipeline_mode=weight_pipeline_mode)

        in_specs = ([pl.BlockSpec((tm, f), lambda i: (i, 0))]
                    + [invariant_spec(a) for a in ordered])
        return pl.pallas_call(
            functools.partial(frame_embed_kernel, e_real=e),
            out_shape=jax.ShapeDtypeStruct((n_pad, e_pad), x.dtype),
            grid_spec=pltpu.PrefetchScalarGridSpec(
                num_scalar_prefetch=0,
                grid=(n_pad // tm,),
                in_specs=in_specs,
                out_specs=pl.BlockSpec((tm, e_pad), lambda i: (i, 0)),
            ),
            compiler_params=pltpu.CompilerParams(
                # NOTE(v7x): keep n_pad // tm >= 2 where possible so both
                # TensorCores get work on this "parallel" axis.
                dimension_semantics=("parallel",),
                vmem_limit_bytes=vmem_limit),
        )

    try:
        # Grid-invariant weights / LN vectors need only one buffer; this halves
        # their VMEM footprint (the fit-or-not difference on v7x's 64 MiB VMEM).
        out = jax.block_until_ready(build(pl.Buffered(1))(x2, *ordered))
    except Exception:
        # Fallback: default double buffering if single-buffer pipeline_mode is
        # not supported by this JAX version.
        out = build(None)(x2, *ordered)

    return out[:n, :e].reshape(b, t, e)


def init_params(key, feature_size, embed_dim, weight_dtype=jnp.bfloat16):
    """Deterministic synthetic parameters matching FrameEmbed's layer shapes.

    Linear weights are stored as (in, out) in bf16 (transposed vs. PyTorch's
    (out, in)); biases / LayerNorm gamma/beta are 1-D f32 vectors.
    For best MXU/store efficiency pick feature_size/embed_dim so that
    4f, 4e, 2e are multiples of 128 (the kernel only pads the output axis).
    """
    f, e = feature_size, embed_dim
    dims = [(f, 4 * f), (4 * f, 4 * e), (4 * e, 2 * e), (2 * e, e)]
    keys = iter(jax.random.split(key, 2 + 4 * len(dims)))
    p = {}
    p["wu"] = (jax.random.normal(next(keys), (f, e), jnp.float32) * 0.02).astype(weight_dtype)
    p["bu"] = jax.random.normal(next(keys), (e,), jnp.float32) * 0.02
    for idx, (din, dout) in enumerate(dims, start=1):
        p[f"w{idx}"] = (jax.random.normal(next(keys), (din, dout), jnp.float32) * 0.02
                        ).astype(weight_dtype)
        p[f"b{idx}"] = jax.random.normal(next(keys), (dout,), jnp.float32) * 0.02
        p[f"g{idx}"] = 1.0 + jax.random.normal(next(keys), (dout,), jnp.float32) * 0.1
        p[f"be{idx}"] = jax.random.normal(next(keys), (dout,), jnp.float32) * 0.02
    return p


def _reference(x, p):
    """Pure-JAX f32 reference (same bf16-stored weights, f32 math throughout)."""
    b, t, f = x.shape
    x2 = x.reshape(b * t, f).astype(jnp.float32)
    w = lambda k: p[k].astype(jnp.float32)
    up = x2 @ w("wu") + p["bu"]
    h = x2 @ w("w1") + p["b1"]
    h = _gelu(_layernorm(h, p["g1"], p["be1"]))
    h = h @ w("w2") + p["b2"]
    h = _gelu(_layernorm(h, p["g2"], p["be2"]))
    h = h @ w("w3") + p["b3"]
    h = _gelu(_layernorm(h, p["g3"], p["be3"]))
    h = h @ w("w4") + p["b4"]
    h = _layernorm(h, p["g4"], p["be4"])
    return (up + h).reshape(b, t, -1)


if __name__ == "__main__":
    B, T, F, E = 2, 8, 32, 32   # small shapes: b*t = 16 tokens
    key = jax.random.PRNGKey(0)
    kx, kp = jax.random.split(key)
    x = jax.random.normal(kx, (B, T, F), jnp.float32)
    params = init_params(kp, F, E)

    out = frame_embed(x, params)
    out = jax.block_until_ready(out)

    ref = _reference(x, params)
    assert out.shape == (B, T, E), out.shape
    max_err = float(jnp.max(jnp.abs(out - ref)))
    # bf16 matmul path vs f32 reference: tolerance set for bf16 operand rounding.
    assert jnp.allclose(out, ref, atol=5e-2, rtol=5e-2), f"mismatch vs reference (max abs err={max_err})"
    print("KERNEL_OK")
</pallas_src>

<mosaic_0001>
module attributes {stable_mosaic.version = 11 : i64} {
  func.func @frame_embed_kernel(%arg0: i32, %arg1: memref<16x32xf32, #tpu.memory_space<vmem>>, %arg2: memref<32x128xbf16, #tpu.memory_space<vmem>>, %arg3: memref<32x128xbf16, #tpu.memory_space<vmem>>, %arg4: memref<3x128xf32, #tpu.memory_space<vmem>>, %arg5: memref<128x128xbf16, #tpu.memory_space<vmem>>, %arg6: memref<3x128xf32, #tpu.memory_space<vmem>>, %arg7: memref<128x64xbf16, #tpu.memory_space<vmem>>, %arg8: memref<3x64xf32, #tpu.memory_space<vmem>>, %arg9: memref<64x128xbf16, #tpu.memory_space<vmem>>, %arg10: memref<4x128xf32, #tpu.memory_space<vmem>>, %arg11: memref<16x128xf32, #tpu.memory_space<vmem>>) attributes {dimension_semantics = [#tpu.dimension_semantics<parallel>], iteration_bounds = array<i64: 1>, scalar_prefetch = 0 : i64, scratch_operands = 0 : i64, tpu.core_type = #tpu.core_type<tc>, window_params = [{transform_indices = @transform_0, window_bounds = array<i64: 16, 32>}, {pipeline_mode = #tpu.pipeline_mode<synchronous>, transform_indices = @transform_1, window_bounds = array<i64: 32, 128>}, {pipeline_mode = #tpu.pipeline_mode<synchronous>, transform_indices = @transform_2, window_bounds = array<i64: 32, 128>}, {pipeline_mode = #tpu.pipeline_mode<synchronous>, transform_indices = @transform_3, window_bounds = array<i64: 3, 128>}, {pipeline_mode = #tpu.pipeline_mode<synchronous>, transform_indices = @transform_4, window_bounds = array<i64: 128, 128>}, {pipeline_mode = #tpu.pipeline_mode<synchronous>, transform_indices = @transform_5, window_bounds = array<i64: 3, 128>}, {pipeline_mode = #tpu.pipeline_mode<synchronous>, transform_indices = @transform_6, window_bounds = array<i64: 128, 64>}, {pipeline_mode = #tpu.pipeline_mode<synchronous>, transform_indices = @transform_7, window_bounds = array<i64: 3, 64>}, {pipeline_mode = #tpu.pipeline_mode<synchronous>, transform_indices = @transform_8, window_bounds = array<i64: 64, 128>}, {pipeline_mode = #tpu.pipeline_mode<synchronous>, transform_indices = @transform_9, window_bounds = array<i64: 4, 128>}, {transform_indices = @transform_10, window_bounds = array<i64: 16, 128>}]} {
    %c0 = arith.constant 0 : index
    %c0_0 = arith.constant 0 : index
    %0 = vector.load %arg1[%c0, %c0_0] : memref<16x32xf32, #tpu.memory_space<vmem>>, vector<16x32xf32>
    %1 = arith.truncf %0 : vector<16x32xf32> to vector<16x32xbf16>
    %c0_1 = arith.constant 0 : index
    %c0_2 = arith.constant 0 : index
    %2 = vector.load %arg4[%c0_1, %c0_2] : memref<3x128xf32, #tpu.memory_space<vmem>>, vector<3x128xf32>
    %c0_3 = arith.constant 0 : index
    %c0_4 = arith.constant 0 : index
    %3 = vector.load %arg6[%c0_3, %c0_4] : memref<3x128xf32, #tpu.memory_space<vmem>>, vector<3x128xf32>
    %c0_5 = arith.constant 0 : index
    %c0_6 = arith.constant 0 : index
    %4 = vector.load %arg8[%c0_5, %c0_6] : memref<3x64xf32, #tpu.memory_space<vmem>>, vector<3x64xf32>
    %c0_7 = arith.constant 0 : index
    %c0_8 = arith.constant 0 : index
    %5 = vector.load %arg10[%c0_7, %c0_8] : memref<4x128xf32, #tpu.memory_space<vmem>>, vector<4x128xf32>
    %c0_9 = arith.constant 0 : index
    %c0_10 = arith.constant 0 : index
    %6 = vector.load %arg3[%c0_9, %c0_10] : memref<32x128xbf16, #tpu.memory_space<vmem>>, vector<32x128xbf16>
    %cst = arith.constant dense<0.000000e+00> : vector<16x128xf32>
    %7 = tpu.matmul %1, %6, %cst {dimension_numbers = #tpu.dot_dimension_numbers<[1], [0], [0], [1], [0, 0, 1, 1], [], []>} : vector<16x32xbf16>, vector<32x128xbf16>, vector<16x128xf32> -> vector<16x128xf32>
    %8 = vector.extract_strided_slice %2 {offsets = [0, 0], sizes = [1, 128], strides = [1, 1]} : vector<3x128xf32> to vector<1x128xf32>
    %9 = vector.broadcast %8 : vector<1x128xf32> to vector<16x128xf32>
    %10 = arith.addf %7, %9 : vector<16x128xf32>
    %11 = vector.extract_strided_slice %2 {offsets = [1, 0], sizes = [1, 128], strides = [1, 1]} : vector<3x128xf32> to vector<1x128xf32>
    %12 = vector.extract_strided_slice %2 {offsets = [2, 0], sizes = [1, 128], strides = [1, 1]} : vector<3x128xf32> to vector<1x128xf32>
    %cst_11 = arith.constant dense<0.000000e+00> : vector<16xf32>
    %13 = vector.multi_reduction <add>, %10, %cst_11 [1] : vector<16x128xf32> to vector<16xf32>
    %14 = vector.shape_cast %13 : vector<16xf32> to vector<16x1xf32>
    %15 = arith.mulf %10, %10 : vector<16x128xf32>
    %cst_12 = arith.constant dense<0.000000e+00> : vector<16xf32>
    %16 = vector.multi_reduction <add>, %15, %cst_12 [1] : vector<16x128xf32> to vector<16xf32>
    %17 = vector.shape_cast %16 : vector<16xf32> to vector<16x1xf32>
    %cst_13 = arith.constant 1.280000e+02 : f32
    %18 = vector.broadcast %cst_13 : f32 to vector<16x1xf32>
    %19 = arith.divf %14, %18 : vector<16x1xf32>
    %cst_14 = arith.constant 1.280000e+02 : f32
    %20 = vector.broadcast %cst_14 : f32 to vector<16x1xf32>
    %21 = arith.divf %17, %20 : vector<16x1xf32>
    %22 = arith.mulf %19, %19 : vector<16x1xf32>
    %23 = arith.subf %21, %22 : vector<16x1xf32>
    %cst_15 = arith.constant 0.000000e+00 : f32
    %24 = vector.broadcast %cst_15 : f32 to vector<16x1xf32>
    %25 = arith.maximumf %23, %24 : vector<16x1xf32>
    %26 = vector.broadcast %19 : vector<16x1xf32> to vector<16x128xf32>
    %27 = arith.subf %10, %26 : vector<16x128xf32>
    %cst_16 = arith.constant 9.99999974E-6 : f32
    %28 = vector.broadcast %cst_16 : f32 to vector<16x1xf32>
    %29 = arith.addf %25, %28 : vector<16x1xf32>
    %30 = math.rsqrt %29 : vector<16x1xf32>
    %31 = vector.broadcast %30 : vector<16x1xf32> to vector<16x128xf32>
    %32 = arith.mulf %27, %31 : vector<16x128xf32>
    %33 = vector.broadcast %11 : vector<1x128xf32> to vector<16x128xf32>
    %34 = arith.mulf %32, %33 : vector<16x128xf32>
    %35 = vector.broadcast %12 : vector<1x128xf32> to vector<16x128xf32>
    %36 = arith.addf %34, %35 : vector<16x128xf32>
    %cst_17 = arith.constant 5.000000e-01 : f32
    %37 = vector.broadcast %cst_17 : f32 to vector<16x128xf32>
    %38 = arith.mulf %37, %36 : vector<16x128xf32>
    %cst_18 = arith.constant 4.471500e-02 : f32
    %39 = vector.broadcast %cst_18 : f32 to vector<16x128xf32>
    %40 = arith.mulf %39, %36 : vector<16x128xf32>
    %41 = arith.mulf %40, %36 : vector<16x128xf32>
    %42 = arith.mulf %41, %36 : vector<16x128xf32>
    %43 = arith.addf %36, %42 : vector<16x128xf32>
    %cst_19 = arith.constant 0.797884583 : f32
    %44 = vector.broadcast %cst_19 : f32 to vector<16x128xf32>
    %45 = arith.mulf %44, %43 : vector<16x128xf32>
    %46 = math.tanh %45 : vector<16x128xf32>
    %cst_20 = arith.constant 1.000000e+00 : f32
    %47 = vector.broadcast %cst_20 : f32 to vector<16x128xf32>
    %48 = arith.addf %47, %46 : vector<16x128xf32>
    %49 = arith.mulf %38, %48 : vector<16x128xf32>
    %50 = arith.truncf %49 : vector<16x128xf32> to vector<16x128xbf16>
    %c0_21 = arith.constant 0 : index
    %c0_22 = arith.constant 0 : index
    %51 = vector.load %arg5[%c0_21, %c0_22] : memref<128x128xbf16, #tpu.memory_space<vmem>>, vector<128x128xbf16>
    %cst_23 = arith.constant dense<0.000000e+00> : vector<16x128xf32>
    %52 = tpu.matmul %50, %51, %cst_23 {dimension_numbers = #tpu.dot_dimension_numbers<[1], [0], [0], [1], [0, 0, 1, 1], [], []>} : vector<16x128xbf16>, vector<128x128xbf16>, vector<16x128xf32> -> vector<16x128xf32>
    %53 = vector.extract_strided_slice %3 {offsets = [0, 0], sizes = [1, 128], strides = [1, 1]} : vector<3x128xf32> to vector<1x128xf32>
    %54 = vector.broadcast %53 : vector<1x128xf32> to vector<16x128xf32>
    %55 = arith.addf %52, %54 : vector<16x128xf32>
    %56 = vector.extract_strided_slice %3 {offsets = [1, 0], sizes = [1, 128], strides = [1, 1]} : vector<3x128xf32> to vector<1x128xf32>
    %57 = vector.extract_strided_slice %3 {offsets = [2, 0], sizes = [1, 128], strides = [1, 1]} : vector<3x128xf32> to vector<1x128xf32>
    %cst_24 = arith.constant dense<0.000000e+00> : vector<16xf32>
    %58 = vector.multi_reduction <add>, %55, %cst_24 [1] : vector<16x128xf32> to vector<16xf32>
    %59 = vector.shape_cast %58 : vector<16xf32> to vector<16x1xf32>
    %60 = arith.mulf %55, %55 : vector<16x128xf32>
    %cst_25 = arith.constant dense<0.000000e+00> : vector<16xf32>
    %61 = vector.multi_reduction <add>, %60, %cst_25 [1] : vector<16x128xf32> to vector<16xf32>
    %62 = vector.shape_cast %61 : vector<16xf32> to vector<16x1xf32>
    %cst_26 = arith.constant 1.280000e+02 : f32
    %63 = vector.broadcast %cst_26 : f32 to vector<16x1xf32>
    %64 = arith.divf %59, %63 : vector<16x1xf32>
    %cst_27 = arith.constant 1.280000e+02 : f32
    %65 = vector.broadcast %cst_27 : f32 to vector<16x1xf32>
    %66 = arith.divf %62, %65 : vector<16x1xf32>
    %67 = arith.mulf %64, %64 : vector<16x1xf32>
    %68 = arith.subf %66, %67 : vector<16x1xf32>
    %cst_28 = arith.constant 0.000000e+00 : f32
    %69 = vector.broadcast %cst_28 : f32 to vector<16x1xf32>
    %70 = arith.maximumf %68, %69 : vector<16x1xf32>
    %71 = vector.broadcast %64 : vector<16x1xf32> to vector<16x128xf32>
    %72 = arith.subf %55, %71 : vector<16x128xf32>
    %cst_29 = arith.constant 9.99999974E-6 : f32
    %73 = vector.broadcast %cst_29 : f32 to vector<16x1xf32>
    %74 = arith.addf %70, %73 : vector<16x1xf32>
    %75 = math.rsqrt %74 : vector<16x1xf32>
    %76 = vector.broadcast %75 : vector<16x1xf32> to vector<16x128xf32>
    %77 = arith.mulf %72, %76 : vector<16x128xf32>
    %78 = vector.broadcast %56 : vector<1x128xf32> to vector<16x128xf32>
    %79 = arith.mulf %77, %78 : vector<16x128xf32>
    %80 = vector.broadcast %57 : vector<1x128xf32> to vector<16x128xf32>
    %81 = arith.addf %79, %80 : vector<16x128xf32>
    %cst_30 = arith.constant 5.000000e-01 : f32
    %82 = vector.broadcast %cst_30 : f32 to vector<16x128xf32>
    %83 = arith.mulf %82, %81 : vector<16x128xf32>
    %cst_31 = arith.constant 4.471500e-02 : f32
    %84 = vector.broadcast %cst_31 : f32 to vector<16x128xf32>
    %85 = arith.mulf %84, %81 : vector<16x128xf32>
    %86 = arith.mulf %85, %81 : vector<16x128xf32>
    %87 = arith.mulf %86, %81 : vector<16x128xf32>
    %88 = arith.addf %81, %87 : vector<16x128xf32>
    %cst_32 = arith.constant 0.797884583 : f32
    %89 = vector.broadcast %cst_32 : f32 to vector<16x128xf32>
    %90 = arith.mulf %89, %88 : vector<16x128xf32>
    %91 = math.tanh %90 : vector<16x128xf32>
    %cst_33 = arith.constant 1.000000e+00 : f32
    %92 = vector.broadcast %cst_33 : f32 to vector<16x128xf32>
    %93 = arith.addf %92, %91 : vector<16x128xf32>
    %94 = arith.mulf %83, %93 : vector<16x128xf32>
    %95 = arith.truncf %94 : vector<16x128xf32> to vector<16x128xbf16>
    %c0_34 = arith.constant 0 : index
    %c0_35 = arith.constant 0 : index
    %96 = vector.load %arg7[%c0_34, %c0_35] : memref<128x64xbf16, #tpu.memory_space<vmem>>, vector<128x64xbf16>
    %cst_36 = arith.constant dense<0.000000e+00> : vector<16x64xf32>
    %97 = tpu.matmul %95, %96, %cst_36 {dimension_numbers = #tpu.dot_dimension_numbers<[1], [0], [0], [1], [0, 0, 1, 1], [], []>} : vector<16x128xbf16>, vector<128x64xbf16>, vector<16x64xf32> -> vector<16x64xf32>
    %98 = vector.extract_strided_slice %4 {offsets = [0, 0], sizes = [1, 64], strides = [1, 1]} : vector<3x64xf32> to vector<1x64xf32>
    %99 = vector.broadcast %98 : vector<1x64xf32> to vector<16x64xf32>
    %100 = arith.addf %97, %99 : vector<16x64xf32>
    %101 = vector.extract_strided_slice %4 {offsets = [1, 0], sizes = [1, 64], strides = [1, 1]} : vector<3x64xf32> to vector<1x64xf32>
    %102 = vector.extract_strided_slice %4 {offsets = [2, 0], sizes = [1, 64], strides = [1, 1]} : vector<3x64xf32> to vector<1x64xf32>
    %cst_37 = arith.constant dense<0.000000e+00> : vector<16xf32>
    %103 = vector.multi_reduction <add>, %100, %cst_37 [1] : vector<16x64xf32> to vector<16xf32>
    %104 = vector.shape_cast %103 : vector<16xf32> to vector<16x1xf32>
    %105 = arith.mulf %100, %100 : vector<16x64xf32>
    %cst_38 = arith.constant dense<0.000000e+00> : vector<16xf32>
    %106 = vector.multi_reduction <add>, %105, %cst_38 [1] : vector<16x64xf32> to vector<16xf32>
    %107 = vector.shape_cast %106 : vector<16xf32> to vector<16x1xf32>
    %cst_39 = arith.constant 6.400000e+01 : f32
    %108 = vector.broadcast %cst_39 : f32 to vector<16x1xf32>
    %109 = arith.divf %104, %108 : vector<16x1xf32>
    %cst_40 = arith.constant 6.400000e+01 : f32
    %110 = vector.broadcast %cst_40 : f32 to vector<16x1xf32>
    %111 = arith.divf %107, %110 : vector<16x1xf32>
    %112 = arith.mulf %109, %109 : vector<16x1xf32>
    %113 = arith.subf %111, %112 : vector<16x1xf32>
    %cst_41 = arith.constant 0.000000e+00 : f32
    %114 = vector.broadcast %cst_41 : f32 to vector<16x1xf32>
    %115 = arith.maximumf %113, %114 : vector<16x1xf32>
    %116 = vector.broadcast %109 : vector<16x1xf32> to vector<16x64xf32>
    %117 = arith.subf %100, %116 : vector<16x64xf32>
    %cst_42 = arith.constant 9.99999974E-6 : f32
    %118 = vector.broadcast %cst_42 : f32 to vector<16x1xf32>
    %119 = arith.addf %115, %118 : vector<16x1xf32>
    %120 = math.rsqrt %119 : vector<16x1xf32>
    %121 = vector.broadcast %120 : vector<16x1xf32> to vector<16x64xf32>
    %122 = arith.mulf %117, %121 : vector<16x64xf32>
    %123 = vector.broadcast %101 : vector<1x64xf32> to vector<16x64xf32>
    %124 = arith.mulf %122, %123 : vector<16x64xf32>
    %125 = vector.broadcast %102 : vector<1x64xf32> to vector<16x64xf32>
    %126 = arith.addf %124, %125 : vector<16x64xf32>
    %cst_43 = arith.constant 5.000000e-01 : f32
    %127 = vector.broadcast %cst_43 : f32 to vector<16x64xf32>
    %128 = arith.mulf %127, %126 : vector<16x64xf32>
    %cst_44 = arith.constant 4.471500e-02 : f32
    %129 = vector.broadcast %cst_44 : f32 to vector<16x64xf32>
    %130 = arith.mulf %129, %126 : vector<16x64xf32>
    %131 = arith.mulf %130, %126 : vector<16x64xf32>
    %132 = arith.mulf %131, %126 : vector<16x64xf32>
    %133 = arith.addf %126, %132 : vector<16x64xf32>
    %cst_45 = arith.constant 0.797884583 : f32
    %134 = vector.broadcast %cst_45 : f32 to vector<16x64xf32>
    %135 = arith.mulf %134, %133 : vector<16x64xf32>
    %136 = math.tanh %135 : vector<16x64xf32>
    %cst_46 = arith.constant 1.000000e+00 : f32
    %137 = vector.broadcast %cst_46 : f32 to vector<16x64xf32>
    %138 = arith.addf %137, %136 : vector<16x64xf32>
    %139 = arith.mulf %128, %138 : vector<16x64xf32>
    %140 = arith.truncf %139 : vector<16x64xf32> to vector<16x64xbf16>
    %c0_47 = arith.constant 0 : index
    %c0_48 = arith.constant 0 : index
    %141 = vector.load %arg9[%c0_47, %c0_48] : memref<64x128xbf16, #tpu.memory_space<vmem>>, vector<64x128xbf16>
    %cst_49 = arith.constant dense<0.000000e+00> : vector<16x128xf32>
    %142 = tpu.matmul %140, %141, %cst_49 {dimension_numbers = #tpu.dot_dimension_numbers<[1], [0], [0], [1], [0, 0, 1, 1], [], []>} : vector<16x64xbf16>, vector<64x128xbf16>, vector<16x128xf32> -> vector<16x128xf32>
    %143 = vector.extract_strided_slice %5 {offsets = [1, 0], sizes = [1, 128], strides = [1, 1]} : vector<4x128xf32> to vector<1x128xf32>
    %144 = vector.broadcast %143 : vector<1x128xf32> to vector<16x128xf32>
    %145 = arith.addf %142, %144 : vector<16x128xf32>
    %146 = vector.extract_strided_slice %5 {offsets = [2, 0], sizes = [1, 128], strides = [1, 1]} : vector<4x128xf32> to vector<1x128xf32>
    %147 = vector.extract_strided_slice %5 {offsets = [3, 0], sizes = [1, 128], strides = [1, 1]} : vector<4x128xf32> to vector<1x128xf32>
    %cst_50 = arith.constant dense<0.000000e+00> : vector<16xf32>
    %148 = vector.multi_reduction <add>, %145, %cst_50 [1] : vector<16x128xf32> to vector<16xf32>
    %149 = vector.shape_cast %148 : vector<16xf32> to vector<16x1xf32>
    %150 = arith.mulf %145, %145 : vector<16x128xf32>
    %cst_51 = arith.constant dense<0.000000e+00> : vector<16xf32>
    %151 = vector.multi_reduction <add>, %150, %cst_51 [1] : vector<16x128xf32> to vector<16xf32>
    %152 = vector.shape_cast %151 : vector<16xf32> to vector<16x1xf32>
    %cst_52 = arith.constant 3.200000e+01 : f32
    %153 = vector.broadcast %cst_52 : f32 to vector<16x1xf32>
    %154 = arith.divf %149, %153 : vector<16x1xf32>
    %cst_53 = arith.constant 3.200000e+01 : f32
    %155 = vector.broadcast %cst_53 : f32 to vector<16x1xf32>
    %156 = arith.divf %152, %155 : vector<16x1xf32>
    %157 = arith.mulf %154, %154 : vector<16x1xf32>
    %158 = arith.subf %156, %157 : vector<16x1xf32>
    %cst_54 = arith.constant 0.000000e+00 : f32
    %159 = vector.broadcast %cst_54 : f32 to vector<16x1xf32>
    %160 = arith.maximumf %158, %159 : vector<16x1xf32>
    %161 = vector.broadcast %154 : vector<16x1xf32> to vector<16x128xf32>
    %162 = arith.subf %145, %161 : vector<16x128xf32>
    %cst_55 = arith.constant 9.99999974E-6 : f32
    %163 = vector.broadcast %cst_55 : f32 to vector<16x1xf32>
    %164 = arith.addf %160, %163 : vector<16x1xf32>
    %165 = math.rsqrt %164 : vector<16x1xf32>
    %166 = vector.broadcast %165 : vector<16x1xf32> to vector<16x128xf32>
    %167 = arith.mulf %162, %166 : vector<16x128xf32>
    %168 = vector.broadcast %146 : vector<1x128xf32> to vector<16x128xf32>
    %169 = arith.mulf %167, %168 : vector<16x128xf32>
    %170 = vector.broadcast %147 : vector<1x128xf32> to vector<16x128xf32>
    %171 = arith.addf %169, %170 : vector<16x128xf32>
    %c0_56 = arith.constant 0 : index
    %c0_57 = arith.constant 0 : index
    %172 = vector.load %arg2[%c0_56, %c0_57] : memref<32x128xbf16, #tpu.memory_space<vmem>>, vector<32x128xbf16>
    %cst_58 = arith.constant dense<0.000000e+00> : vector<16x128xf32>
    %173 = tpu.matmul %1, %172, %cst_58 {dimension_numbers = #tpu.dot_dimension_numbers<[1], [0], [0], [1], [0, 0, 1, 1], [], []>} : vector<16x32xbf16>, vector<32x128xbf16>, vector<16x128xf32> -> vector<16x128xf32>
    %174 = vector.extract_strided_slice %5 {offsets = [0, 0], sizes = [1, 128], strides = [1, 1]} : vector<4x128xf32> to vector<1x128xf32>
    %175 = vector.broadcast %174 : vector<1x128xf32> to vector<16x128xf32>
    %176 = arith.addf %173, %175 : vector<16x128xf32>
    %177 = arith.addf %176, %171 : vector<16x128xf32>
    %c0_59 = arith.constant 0 : index
    %c0_60 = arith.constant 0 : index
    %178 = vector.load %arg11[%c0_59, %c0_60] : memref<16x128xf32, #tpu.memory_space<vmem>>, vector<16x128xf32>
    tpu.vector_store %arg11[%c0_59, %c0_60], %177 {strides = array<i32>} : memref<16x128xf32, #tpu.memory_space<vmem>>, vector<16x128xf32>,
    return
  }
  func.func @transform_0(%arg0: i32) -> (i32, i32) {
    %c0_i32 = arith.constant 0 : i32
    %c0_i32_0 = arith.constant 0 : i32
    return %arg0, %c0_i32 : i32, i32
  }
  func.func @transform_1(%arg0: i32) -> (i32, i32) {
    %c0_i32 = arith.constant 0 : i32
    %c0_i32_0 = arith.constant 0 : i32
    %c0_i32_1 = arith.constant 0 : i32
    return %c0_i32, %c0_i32_0 : i32, i32
  }
  func.func @transform_2(%arg0: i32) -> (i32, i32) {
    %c0_i32 = arith.constant 0 : i32
    %c0_i32_0 = arith.constant 0 : i32
    %c0_i32_1 = arith.constant 0 : i32
    return %c0_i32, %c0_i32_0 : i32, i32
  }
  func.func @transform_3(%arg0: i32) -> (i32, i32) {
    %c0_i32 = arith.constant 0 : i32
    %c0_i32_0 = arith.constant 0 : i32
    %c0_i32_1 = arith.constant 0 : i32
    return %c0_i32, %c0_i32_0 : i32, i32
  }
  func.func @transform_4(%arg0: i32) -> (i32, i32) {
    %c0_i32 = arith.constant 0 : i32
    %c0_i32_0 = arith.constant 0 : i32
    %c0_i32_1 = arith.constant 0 : i32
    return %c0_i32, %c0_i32_0 : i32, i32
  }
  func.func @transform_5(%arg0: i32) -> (i32, i32) {
    %c0_i32 = arith.constant 0 : i32
    %c0_i32_0 = arith.constant 0 : i32
    %c0_i32_1 = arith.constant 0 : i32
    return %c0_i32, %c0_i32_0 : i32, i32
  }
  func.func @transform_6(%arg0: i32) -> (i32, i32) {
    %c0_i32 = arith.constant 0 : i32
    %c0_i32_0 = arith.constant 0 : i32
    %c0_i32_1 = arith.constant 0 : i32
    return %c0_i32, %c0_i32_0 : i32, i32
  }
  func.func @transform_7(%arg0: i32) -> (i32, i32) {
    %c0_i32 = arith.constant 0 : i32
    %c0_i32_0 = arith.constant 0 : i32
    %c0_i32_1 = arith.constant 0 : i32
    return %c0_i32, %c0_i32_0 : i32, i32
  }
  func.func @transform_8(%arg0: i32) -> (i32, i32) {
    %c0_i32 = arith.constant 0 : i32
    %c0_i32_0 = arith.constant 0 : i32
    %c0_i32_1 = arith.constant 0 : i32
    return %c0_i32, %c0_i32_0 : i32, i32
  }
  func.func @transform_9(%arg0: i32) -> (i32, i32) {
    %c0_i32 = arith.constant 0 : i32
    %c0_i32_0 = arith.constant 0 : i32
    %c0_i32_1 = arith.constant 0 : i32
    return %c0_i32, %c0_i32_0 : i32, i32
  }
  func.func @transform_10(%arg0: i32) -> (i32, i32) {
    %c0_i32 = arith.constant 0 : i32
    %c0_i32_0 = arith.constant 0 : i32
    return %arg0, %c0_i32 : i32, i32
  }
}

module attributes {stable_mosaic.version = 11 : i64} {
  func.func @frame_embed_kernel(%arg0: i32, %arg1: memref<16x32xf32, #tpu.memory_space<vmem>>, %arg2: memref<32x128xbf16, #tpu.memory_space<vmem>>, %arg3: memref<32x128xbf16, #tpu.memory_space<vmem>>, %arg4: memref<3x128xf32, #tpu.memory_space<vmem>>, %arg5: memref<128x128xbf16, #tpu.memory_space<vmem>>, %arg6: memref<3x128xf32, #tpu.memory_space<vmem>>, %arg7: memref<128x64xbf16, #tpu.memory_space<vmem>>, %arg8: memref<3x64xf32, #tpu.memory_space<vmem>>, %arg9: memref<64x128xbf16, #tpu.memory_space<vmem>>, %arg10: memref<4x128xf32, #tpu.memory_space<vmem>>, %arg11: memref<16x128xf32, #tpu.memory_space<vmem>>) attributes {dimension_semantics = [#tpu.dimension_semantics<parallel>], iteration_bounds = array<i64: 1>, scalar_prefetch = 0 : i64, scratch_operands = 0 : i64, tpu.core_type = #tpu.core_type<tc>, window_params = [{transform_indices = @transform_0, window_bounds = array<i64: 16, 32>}, {pipeline_mode = #tpu.pipeline_mode<synchronous>, transform_indices = @transform_1, window_bounds = array<i64: 32, 128>}, {pipeline_mode = #tpu.pipeline_mode<synchronous>, transform_indices = @transform_2, window_bounds = array<i64: 32, 128>}, {pipeline_mode = #tpu.pipeline_mode<synchronous>, transform_indices = @transform_3, window_bounds = array<i64: 3, 128>}, {pipeline_mode = #tpu.pipeline_mode<synchronous>, transform_indices = @transform_4, window_bounds = array<i64: 128, 128>}, {pipeline_mode = #tpu.pipeline_mode<synchronous>, transform_indices = @transform_5, window_bounds = array<i64: 3, 128>}, {pipeline_mode = #tpu.pipeline_mode<synchronous>, transform_indices = @transform_6, window_bounds = array<i64: 128, 64>}, {pipeline_mode = #tpu.pipeline_mode<synchronous>, transform_indices = @transform_7, window_bounds = array<i64: 3, 64>}, {pipeline_mode = #tpu.pipeline_mode<synchronous>, transform_indices = @transform_8, window_bounds = array<i64: 64, 128>}, {pipeline_mode = #tpu.pipeline_mode<synchronous>, transform_indices = @transform_9, window_bounds = array<i64: 4, 128>}, {transform_indices = @transform_10, window_bounds = array<i64: 16, 128>}]} {
    %c0 = arith.constant 0 : index
    %c0_0 = arith.constant 0 : index
    %0 = vector.load %arg1[%c0, %c0_0] : memref<16x32xf32, #tpu.memory_space<vmem>>, vector<16x32xf32>
    %1 = arith.truncf %0 : vector<16x32xf32> to vector<16x32xbf16>
    %c0_1 = arith.constant 0 : index
    %c0_2 = arith.constant 0 : index
    %2 = vector.load %arg4[%c0_1, %c0_2] : memref<3x128xf32, #tpu.memory_space<vmem>>, vector<3x128xf32>
    %c0_3 = arith.constant 0 : index
    %c0_4 = arith.constant 0 : index
    %3 = vector.load %arg6[%c0_3, %c0_4] : memref<3x128xf32, #tpu.memory_space<vmem>>, vector<3x128xf32>
    %c0_5 = arith.constant 0 : index
    %c0_6 = arith.constant 0 : index
    %4 = vector.load %arg8[%c0_5, %c0_6] : memref<3x64xf32, #tpu.memory_space<vmem>>, vector<3x64xf32>
    %c0_7 = arith.constant 0 : index
    %c0_8 = arith.constant 0 : index
    %5 = vector.load %arg10[%c0_7, %c0_8] : memref<4x128xf32, #tpu.memory_space<vmem>>, vector<4x128xf32>
    %c0_9 = arith.constant 0 : index
    %c0_10 = arith.constant 0 : index
    %6 = vector.load %arg3[%c0_9, %c0_10] : memref<32x128xbf16, #tpu.memory_space<vmem>>, vector<32x128xbf16>
    %cst = arith.constant dense<0.000000e+00> : vector<16x128xf32>
    %7 = tpu.matmul %1, %6, %cst {dimension_numbers = #tpu.dot_dimension_numbers<[1], [0], [0], [1], [0, 0, 1, 1], [], []>} : vector<16x32xbf16>, vector<32x128xbf16>, vector<16x128xf32> -> vector<16x128xf32>
    %8 = vector.extract_strided_slice %2 {offsets = [0, 0], sizes = [1, 128], strides = [1, 1]} : vector<3x128xf32> to vector<1x128xf32>
    %9 = vector.broadcast %8 : vector<1x128xf32> to vector<16x128xf32>
    %10 = arith.addf %7, %9 : vector<16x128xf32>
    %11 = vector.extract_strided_slice %2 {offsets = [1, 0], sizes = [1, 128], strides = [1, 1]} : vector<3x128xf32> to vector<1x128xf32>
    %12 = vector.extract_strided_slice %2 {offsets = [2, 0], sizes = [1, 128], strides = [1, 1]} : vector<3x128xf32> to vector<1x128xf32>
    %cst_11 = arith.constant dense<0.000000e+00> : vector<16xf32>
    %13 = vector.multi_reduction <add>, %10, %cst_11 [1] : vector<16x128xf32> to vector<16xf32>
    %14 = vector.shape_cast %13 : vector<16xf32> to vector<16x1xf32>
    %15 = arith.mulf %10, %10 : vector<16x128xf32>
    %cst_12 = arith.constant dense<0.000000e+00> : vector<16xf32>
    %16 = vector.multi_reduction <add>, %15, %cst_12 [1] : vector<16x128xf32> to vector<16xf32>
    %17 = vector.shape_cast %16 : vector<16xf32> to vector<16x1xf32>
    %cst_13 = arith.constant 1.280000e+02 : f32
    %18 = vector.broadcast %cst_13 : f32 to vector<16x1xf32>
    %19 = arith.divf %14, %18 : vector<16x1xf32>
    %cst_14 = arith.constant 1.280000e+02 : f32
    %20 = vector.broadcast %cst_14 : f32 to vector<16x1xf32>
    %21 = arith.divf %17, %20 : vector<16x1xf32>
    %22 = arith.mulf %19, %19 : vector<16x1xf32>
    %23 = arith.subf %21, %22 : vector<16x1xf32>
    %cst_15 = arith.constant 0.000000e+00 : f32
    %24 = vector.broadcast %cst_15 : f32 to vector<16x1xf32>
    %25 = arith.maximumf %23, %24 : vector<16x1xf32>
    %26 = vector.broadcast %19 : vector<16x1xf32> to vector<16x128xf32>
    %27 = arith.subf %10, %26 : vector<16x128xf32>
    %cst_16 = arith.constant 9.99999974E-6 : f32
    %28 = vector.broadcast %cst_16 : f32 to vector<16x1xf32>
    %29 = arith.addf %25, %28 : vector<16x1xf32>
    %30 = math.rsqrt %29 : vector<16x1xf32>
    %31 = vector.broadcast %30 : vector<16x1xf32> to vector<16x128xf32>
    %32 = arith.mulf %27, %31 : vector<16x128xf32>
    %33 = vector.broadcast %11 : vector<1x128xf32> to vector<16x128xf32>
    %34 = arith.mulf %32, %33 : vector<16x128xf32>
    %35 = vector.broadcast %12 : vector<1x128xf32> to vector<16x128xf32>
    %36 = arith.addf %34, %35 : vector<16x128xf32>
    %cst_17 = arith.constant 5.000000e-01 : f32
    %37 = vector.broadcast %cst_17 : f32 to vector<16x128xf32>
    %38 = arith.mulf %37, %36 : vector<16x128xf32>
    %cst_18 = arith.constant 4.471500e-02 : f32
    %39 = vector.broadcast %cst_18 : f32 to vector<16x128xf32>
    %40 = arith.mulf %39, %36 : vector<16x128xf32>
    %41 = arith.mulf %40, %36 : vector<16x128xf32>
    %42 = arith.mulf %41, %36 : vector<16x128xf32>
    %43 = arith.addf %36, %42 : vector<16x128xf32>
    %cst_19 = arith.constant 0.797884583 : f32
    %44 = vector.broadcast %cst_19 : f32 to vector<16x128xf32>
    %45 = arith.mulf %44, %43 : vector<16x128xf32>
    %46 = math.tanh %45 : vector<16x128xf32>
    %cst_20 = arith.constant 1.000000e+00 : f32
    %47 = vector.broadcast %cst_20 : f32 to vector<16x128xf32>
    %48 = arith.addf %47, %46 : vector<16x128xf32>
    %49 = arith.mulf %38, %48 : vector<16x128xf32>
    %50 = arith.truncf %49 : vector<16x128xf32> to vector<16x128xbf16>
    %c0_21 = arith.constant 0 : index
    %c0_22 = arith.constant 0 : index
    %51 = vector.load %arg5[%c0_21, %c0_22] : memref<128x128xbf16, #tpu.memory_space<vmem>>, vector<128x128xbf16>
    %cst_23 = arith.constant dense<0.000000e+00> : vector<16x128xf32>
    %52 = tpu.matmul %50, %51, %cst_23 {dimension_numbers = #tpu.dot_dimension_numbers<[1], [0], [0], [1], [0, 0, 1, 1], [], []>} : vector<16x128xbf16>, vector<128x128xbf16>, vector<16x128xf32> -> vector<16x128xf32>
    %53 = vector.extract_strided_slice %3 {offsets = [0, 0], sizes = [1, 128], strides = [1, 1]} : vector<3x128xf32> to vector<1x128xf32>
    %54 = vector.broadcast %53 : vector<1x128xf32> to vector<16x128xf32>
    %55 = arith.addf %52, %54 : vector<16x128xf32>
    %56 = vector.extract_strided_slice %3 {offsets = [1, 0], sizes = [1, 128], strides = [1, 1]} : vector<3x128xf32> to vector<1x128xf32>
    %57 = vector.extract_strided_slice %3 {offsets = [2, 0], sizes = [1, 128], strides = [1, 1]} : vector<3x128xf32> to vector<1x128xf32>
    %cst_24 = arith.constant dense<0.000000e+00> : vector<16xf32>
    %58 = vector.multi_reduction <add>, %55, %cst_24 [1] : vector<16x128xf32> to vector<16xf32>
    %59 = vector.shape_cast %58 : vector<16xf32> to vector<16x1xf32>
    %60 = arith.mulf %55, %55 : vector<16x128xf32>
    %cst_25 = arith.constant dense<0.000000e+00> : vector<16xf32>
    %61 = vector.multi_reduction <add>, %60, %cst_25 [1] : vector<16x128xf32> to vector<16xf32>
    %62 = vector.shape_cast %61 : vector<16xf32> to vector<16x1xf32>
    %cst_26 = arith.constant 1.280000e+02 : f32
    %63 = vector.broadcast %cst_26 : f32 to vector<16x1xf32>
    %64 = arith.divf %59, %63 : vector<16x1xf32>
    %cst_27 = arith.constant 1.280000e+02 : f32
    %65 = vector.broadcast %cst_27 : f32 to vector<16x1xf32>
    %66 = arith.divf %62, %65 : vector<16x1xf32>
    %67 = arith.mulf %64, %64 : vector<16x1xf32>
    %68 = arith.subf %66, %67 : vector<16x1xf32>
    %cst_28 = arith.constant 0.000000e+00 : f32
    %69 = vector.broadcast %cst_28 : f32 to vector<16x1xf32>
    %70 = arith.maximumf %68, %69 : vector<16x1xf32>
    %71 = vector.broadcast %64 : vector<16x1xf32> to vector<16x128xf32>
    %72 = arith.subf %55, %71 : vector<16x128xf32>
    %cst_29 = arith.constant 9.99999974E-6 : f32
    %73 = vector.broadcast %cst_29 : f32 to vector<16x1xf32>
    %74 = arith.addf %70, %73 : vector<16x1xf32>
    %75 = math.rsqrt %74 : vector<16x1xf32>
    %76 = vector.broadcast %75 : vector<16x1xf32> to vector<16x128xf32>
    %77 = arith.mulf %72, %76 : vector<16x128xf32>
    %78 = vector.broadcast %56 : vector<1x128xf32> to vector<16x128xf32>
    %79 = arith.mulf %77, %78 : vector<16x128xf32>
    %80 = vector.broadcast %57 : vector<1x128xf32> to vector<16x128xf32>
    %81 = arith.addf %79, %80 : vector<16x128xf32>
    %cst_30 = arith.constant 5.000000e-01 : f32
    %82 = vector.broadcast %cst_30 : f32 to vector<16x128xf32>
    %83 = arith.mulf %82, %81 : vector<16x128xf32>
    %cst_31 = arith.constant 4.471500e-02 : f32
    %84 = vector.broadcast %cst_31 : f32 to vector<16x128xf32>
    %85 = arith.mulf %84, %81 : vector<16x128xf32>
    %86 = arith.mulf %85, %81 : vector<16x128xf32>
    %87 = arith.mulf %86, %81 : vector<16x128xf32>
    %88 = arith.addf %81, %87 : vector<16x128xf32>
    %cst_32 = arith.constant 0.797884583 : f32
    %89 = vector.broadcast %cst_32 : f32 to vector<16x128xf32>
    %90 = arith.mulf %89, %88 : vector<16x128xf32>
    %91 = math.tanh %90 : vector<16x128xf32>
    %cst_33 = arith.constant 1.000000e+00 : f32
    %92 = vector.broadcast %cst_33 : f32 to vector<16x128xf32>
    %93 = arith.addf %92, %91 : vector<16x128xf32>
    %94 = arith.mulf %83, %93 : vector<16x128xf32>
    %95 = arith.truncf %94 : vector<16x128xf32> to vector<16x128xbf16>
    %c0_34 = arith.constant 0 : index
    %c0_35 = arith.constant 0 : index
    %96 = vector.load %arg7[%c0_34, %c0_35] : memref<128x64xbf16, #tpu.memory_space<vmem>>, vector<128x64xbf16>
    %cst_36 = arith.constant dense<0.000000e+00> : vector<16x64xf32>
    %97 = tpu.matmul %95, %96, %cst_36 {dimension_numbers = #tpu.dot_dimension_numbers<[1], [0], [0], [1], [0, 0, 1, 1], [], []>} : vector<16x128xbf16>, vector<128x64xbf16>, vector<16x64xf32> -> vector<16x64xf32>
    %98 = vector.extract_strided_slice %4 {offsets = [0, 0], sizes = [1, 64], strides = [1, 1]} : vector<3x64xf32> to vector<1x64xf32>
    %99 = vector.broadcast %98 : vector<1x64xf32> to vector<16x64xf32>
    %100 = arith.addf %97, %99 : vector<16x64xf32>
    %101 = vector.extract_strided_slice %4 {offsets = [1, 0], sizes = [1, 64], strides = [1, 1]} : vector<3x64xf32> to vector<1x64xf32>
    %102 = vector.extract_strided_slice %4 {offsets = [2, 0], sizes = [1, 64], strides = [1, 1]} : vector<3x64xf32> to vector<1x64xf32>
    %cst_37 = arith.constant dense<0.000000e+00> : vector<16xf32>
    %103 = vector.multi_reduction <add>, %100, %cst_37 [1] : vector<16x64xf32> to vector<16xf32>
    %104 = vector.shape_cast %103 : vector<16xf32> to vector<16x1xf32>
    %105 = arith.mulf %100, %100 : vector<16x64xf32>
    %cst_38 = arith.constant dense<0.000000e+00> : vector<16xf32>
    %106 = vector.multi_reduction <add>, %105, %cst_38 [1] : vector<16x64xf32> to vector<16xf32>
    %107 = vector.shape_cast %106 : vector<16xf32> to vector<16x1xf32>
    %cst_39 = arith.constant 6.400000e+01 : f32
    %108 = vector.broadcast %cst_39 : f32 to vector<16x1xf32>
    %109 = arith.divf %104, %108 : vector<16x1xf32>
    %cst_40 = arith.constant 6.400000e+01 : f32
    %110 = vector.broadcast %cst_40 : f32 to vector<16x1xf32>
    %111 = arith.divf %107, %110 : vector<16x1xf32>
    %112 = arith.mulf %109, %109 : vector<16x1xf32>
    %113 = arith.subf %111, %112 : vector<16x1xf32>
    %cst_41 = arith.constant 0.000000e+00 : f32
    %114 = vector.broadcast %cst_41 : f32 to vector<16x1xf32>
    %115 = arith.maximumf %113, %114 : vector<16x1xf32>
    %116 = vector.broadcast %109 : vector<16x1xf32> to vector<16x64xf32>
    %117 = arith.subf %100, %116 : vector<16x64xf32>
    %cst_42 = arith.constant 9.99999974E-6 : f32
    %118 = vector.broadcast %cst_42 : f32 to vector<16x1xf32>
    %119 = arith.addf %115, %118 : vector<16x1xf32>
    %120 = math.rsqrt %119 : vector<16x1xf32>
    %121 = vector.broadcast %120 : vector<16x1xf32> to vector<16x64xf32>
    %122 = arith.mulf %117, %121 : vector<16x64xf32>
    %123 = vector.broadcast %101 : vector<1x64xf32> to vector<16x64xf32>
    %124 = arith.mulf %122, %123 : vector<16x64xf32>
    %125 = vector.broadcast %102 : vector<1x64xf32> to vector<16x64xf32>
    %126 = arith.addf %124, %125 : vector<16x64xf32>
    %cst_43 = arith.constant 5.000000e-01 : f32
    %127 = vector.broadcast %cst_43 : f32 to vector<16x64xf32>
    %128 = arith.mulf %127, %126 : vector<16x64xf32>
    %cst_44 = arith.constant 4.471500e-02 : f32
    %129 = vector.broadcast %cst_44 : f32 to vector<16x64xf32>
    %130 = arith.mulf %129, %126 : vector<16x64xf32>
    %131 = arith.mulf %130, %126 : vector<16x64xf32>
    %132 = arith.mulf %131, %126 : vector<16x64xf32>
    %133 = arith.addf %126, %132 : vector<16x64xf32>
    %cst_45 = arith.constant 0.797884583 : f32
    %134 = vector.broadcast %cst_45 : f32 to vector<16x64xf32>
    %135 = arith.mulf %134, %133 : vector<16x64xf32>
    %136 = math.tanh %135 : vector<16x64xf32>
    %cst_46 = arith.constant 1.000000e+00 : f32
    %137 = vector.broadcast %cst_46 : f32 to vector<16x64xf32>
    %138 = arith.addf %137, %136 : vector<16x64xf32>
    %139 = arith.mulf %128, %138 : vector<16x64xf32>
    %140 = arith.truncf %139 : vector<16x64xf32> to vector<16x64xbf16>
    %c0_47 = arith.constant 0 : index
    %c0_48 = arith.constant 0 : index
    %141 = vector.load %arg9[%c0_47, %c0_48] : memref<64x128xbf16, #tpu.memory_space<vmem>>, vector<64x128xbf16>
    %cst_49 = arith.constant dense<0.000000e+00> : vector<16x128xf32>
    %142 = tpu.matmul %140, %141, %cst_49 {dimension_numbers = #tpu.dot_dimension_numbers<[1], [0], [0], [1], [0, 0, 1, 1], [], []>} : vector<16x64xbf16>, vector<64x128xbf16>, vector<16x128xf32> -> vector<16x128xf32>
    %143 = vector.extract_strided_slice %5 {offsets = [1, 0], sizes = [1, 128], strides = [1, 1]} : vector<4x128xf32> to vector<1x128xf32>
    %144 = vector.broadcast %143 : vector<1x128xf32> to vector<16x128xf32>
    %145 = arith.addf %142, %144 : vector<16x128xf32>
    %146 = vector.extract_strided_slice %5 {offsets = [2, 0], sizes = [1, 128], strides = [1, 1]} : vector<4x128xf32> to vector<1x128xf32>
    %147 = vector.extract_strided_slice %5 {offsets = [3, 0], sizes = [1, 128], strides = [1, 1]} : vector<4x128xf32> to vector<1x128xf32>
    %cst_50 = arith.constant dense<0.000000e+00> : vector<16xf32>
    %148 = vector.multi_reduction <add>, %145, %cst_50 [1] : vector<16x128xf32> to vector<16xf32>
    %149 = vector.shape_cast %148 : vector<16xf32> to vector<16x1xf32>
    %150 = arith.mulf %145, %145 : vector<16x128xf32>
    %cst_51 = arith.constant dense<0.000000e+00> : vector<16xf32>
    %151 = vector.multi_reduction <add>, %150, %cst_51 [1] : vector<16x128xf32> to vector<16xf32>
    %152 = vector.shape_cast %151 : vector<16xf32> to vector<16x1xf32>
    %cst_52 = arith.constant 3.200000e+01 : f32
    %153 = vector.broadcast %cst_52 : f32 to vector<16x1xf32>
    %154 = arith.divf %149, %153 : vector<16x1xf32>
    %cst_53 = arith.constant 3.200000e+01 : f32
    %155 = vector.broadcast %cst_53 : f32 to vector<16x1xf32>
    %156 = arith.divf %152, %155 : vector<16x1xf32>
    %157 = arith.mulf %154, %154 : vector<16x1xf32>
    %158 = arith.subf %156, %157 : vector<16x1xf32>
    %cst_54 = arith.constant 0.000000e+00 : f32
    %159 = vector.broadcast %cst_54 : f32 to vector<16x1xf32>
    %160 = arith.maximumf %158, %159 : vector<16x1xf32>
    %161 = vector.broadcast %154 : vector<16x1xf32> to vector<16x128xf32>
    %162 = arith.subf %145, %161 : vector<16x128xf32>
    %cst_55 = arith.constant 9.99999974E-6 : f32
    %163 = vector.broadcast %cst_55 : f32 to vector<16x1xf32>
    %164 = arith.addf %160, %163 : vector<16x1xf32>
    %165 = math.rsqrt %164 : vector<16x1xf32>
    %166 = vector.broadcast %165 : vector<16x1xf32> to vector<16x128xf32>
    %167 = arith.mulf %162, %166 : vector<16x128xf32>
    %168 = vector.broadcast %146 : vector<1x128xf32> to vector<16x128xf32>
    %169 = arith.mulf %167, %168 : vector<16x128xf32>
    %170 = vector.broadcast %147 : vector<1x128xf32> to vector<16x128xf32>
    %171 = arith.addf %169, %170 : vector<16x128xf32>
    %c0_56 = arith.constant 0 : index
    %c0_57 = arith.constant 0 : index
    %172 = vector.load %arg2[%c0_56, %c0_57] : memref<32x128xbf16, #tpu.memory_space<vmem>>, vector<32x128xbf16>
    %cst_58 = arith.constant dense<0.000000e+00> : vector<16x128xf32>
    %173 = tpu.matmul %1, %172, %cst_58 {dimension_numbers = #tpu.dot_dimension_numbers<[1], [0], [0], [1], [0, 0, 1, 1], [], []>} : vector<16x32xbf16>, vector<32x128xbf16>, vector<16x128xf32> -> vector<16x128xf32>
    %174 = vector.extract_strided_slice %5 {offsets = [0, 0], sizes = [1, 128], strides = [1, 1]} : vector<4x128xf32> to vector<1x128xf32>
    %175 = vector.broadcast %174 : vector<1x128xf32> to vector<16x128xf32>
    %176 = arith.addf %173, %175 : vector<16x128xf32>
    %177 = arith.addf %176, %171 : vector<16x128xf32>
    %c0_59 = arith.constant 0 : index
    %c0_60 = arith.constant 0 : index
    %178 = vector.load %arg11[%c0_59, %c0_60] : memref<16x128xf32, #tpu.memory_space<vmem>>, vector<16x128xf32>
    tpu.vector_store %arg11[%c0_59, %c0_60], %177 {strides = array<i32>} : memref<16x128xf32, #tpu.memory_space<vmem>>, vector<16x128xf32>,
    return
  }
  func.func @transform_0(%arg0: i32) -> (i32, i32) {
    %c0_i32 = arith.constant 0 : i32
    %c0_i32_0 = arith.constant 0 : i32
    return %arg0, %c0_i32 : i32, i32
  }
  func.func @transform_1(%arg0: i32) -> (i32, i32) {
    %c0_i32 = arith.constant 0 : i32
    %c0_i32_0 = arith.constant 0 : i32
    %c0_i32_1 = arith.constant 0 : i32
    return %c0_i32, %c0_i32_0 : i32, i32
  }
  func.func @transform_2(%arg0: i32) -> (i32, i32) {
    %c0_i32 = arith.constant 0 : i32
    %c0_i32_0 = arith.constant 0 : i32
    %c0_i32_1 = arith.constant 0 : i32
    return %c0_i32, %c0_i32_0 : i32, i32
  }
  func.func @transform_3(%arg0: i32) -> (i32, i32) {
    %c0_i32 = arith.constant 0 : i32
    %c0_i32_0 = arith.constant 0 : i32
    %c0_i32_1 = arith.constant 0 : i32
    return %c0_i32, %c0_i32_0 : i32, i32
  }
  func.func @transform_4(%arg0: i32) -> (i32, i32) {
    %c0_i32 = arith.constant 0 : i32
    %c0_i32_0 = arith.constant 0 : i32
    %c0_i32_1 = arith.constant 0 : i32
    return %c0_i32, %c0_i32_0 : i32, i32
  }
  func.func @transform_5(%arg0: i32) -> (i32, i32) {
    %c0_i32 = arith.constant 0 : i32
    %c0_i32_0 = arith.constant 0 : i32
    %c0_i32_1 = arith.constant 0 : i32
    return %c0_i32, %c0_i32_0 : i32, i32
  }
  func.func @transform_6(%arg0: i32) -> (i32, i32) {
    %c0_i32 = arith.constant 0 : i32
    %c0_i32_0 = arith.constant 0 : i32
    %c0_i32_1 = arith.constant 0 : i32
    return %c0_i32, %c0_i32_0 : i32, i32
  }
  func.func @transform_7(%arg0: i32) -> (i32, i32) {
    %c0_i32 = arith.constant 0 : i32
    %c0_i32_0 = arith.constant 0 : i32
    %c0_i32_1 = arith.constant 0 : i32
    return %c0_i32, %c0_i32_0 : i32, i32
  }
  func.func @transform_8(%arg0: i32) -> (i32, i32) {
    %c0_i32 = arith.constant 0 : i32
    %c0_i32_0 = arith.constant 0 : i32
    %c0_i32_1 = arith.constant 0 : i32
    return %c0_i32, %c0_i32_0 : i32, i32
  }
  func.func @transform_9(%arg0: i32) -> (i32, i32) {
    %c0_i32 = arith.constant 0 : i32
    %c0_i32_0 = arith.constant 0 : i32
    %c0_i32_1 = arith.constant 0 : i32
    return %c0_i32, %c0_i32_0 : i32, i32
  }
  func.func @transform_10(%arg0: i32) -> (i32, i32) {
    %c0_i32 = arith.constant 0 : i32
    %c0_i32_0 = arith.constant 0 : i32
    return %arg0, %c0_i32 : i32, i32
  }
}

</mosaic_0001>

<bundles_post_ra>
// kernel: tpu_custom_call.1
= control target key start
LH: loop header
LB: loop body
LE: loop exit
PB: predicated region body
PF: predicated region fallthrough
CT: control target
= control target key end

     0   :  { %15 = vsyncpa [#allocation3], 0  ;;  %s1252_s0 = inlined_call_operand.hbm [shape: f32[16,32], index: 0, kind: input, shape index: {}]   ;;  %s1253_s1 = inlined_call_operand.hbm [shape: bf16[32,128], index: 1, kind: input, shape index: {}]   ;;  %s1254_s2 = inlined_call_operand.hbm [shape: bf16[32,128], index: 2, kind: input, shape index: {}]   ;;  %s1255_s3 = inlined_call_operand.vmem [shape: f32[3,128], index: 3, kind: input, shape index: {}]   ;;  %s1256_s4 = inlined_call_operand.vmem [shape: bf16[128,128], index: 4, kind: input, shape index: {}]   ;;  %s1257_s5 = inlined_call_operand.vmem [shape: f32[3,128], index: 5, kind: input, shape index: {}]   ;;  %s1258_s6 = inlined_call_operand.vmem [shape: bf16[128,64], index: 6, kind: input, shape index: {}]   ;;  %s1259_s7 = inlined_call_operand.vmem [shape: f32[3,64], index: 7, kind: input, shape index: {}]   ;;  %s1260_s8 = inlined_call_operand.vmem [shape: bf16[64,128], index: 8, kind: input, shape index: {}]   ;;  %s1261_s9 = inlined_call_operand.vmem [shape: f32[4,128], index: 9, kind: input, shape index: {}]   ;;  %s1262_s10 = inlined_call_operand.hbm [shape: f32[16,128], index: 10, kind: output, shape index: {}]  }
   0x1   :  { %16 = vsyncpa [#allocation6], 0 }
   0x2   :  { %17 = vsyncpa [#allocation4], 0  ;;  %s1028_s13 = smov [#allocation5]  }
   0x3   :  { %s35_s14 = sshll.u32 %s1028_s13, 4  ;;  %s36_s14 = int_to_ptr.vmem [resolvable:$true] %s35_s14 }
   0x4   :  { %s950_s15 = scalar_lea.vmem %s36_s14, 256  ;;  %p955_p1 = scmp.lt.s32.totalorder %s36_s14, %s36_s14 }
   0x5   :  { %p951_p0 = scmp.ne.s32.totalorder %s36_s14, %s950_s15  ;;  %p956_p2 = scmp.lt.s32.totalorder %s950_s15, %s950_s15 }
   0x7   :  { %p957_p3 = por %p956_p2, %p955_p1 }
   0x9   :  { %p958_p4 = pnand %p957_p3, %p951_p0 }
   0xb   :  { %961 = shalt.err (!%p958_p4)
}
   0xc   :  { %s1029_s16 = smov 64   ;;  %s1030_s17 = smov 4  }
   0xd   :  { %41 = dma.hbm_to_vmem [thread:$0]  %s1253_s1, 256, %s36_s14, [#allocation6], %s1029_s16, %s1029_s16, %s1030_s17  }
   0xe   :  { %s1031_s20 = smov [#allocation2]  }
   0xf   :  { %s23_s21 = sshll.u32 %s1031_s20, 4  ;;  %s24_s21 = int_to_ptr.vmem [resolvable:$true] %s23_s21 }
  0x10   :  { %s970_s22 = scalar_lea.vmem %s24_s21, 256  ;;  %p975_p6 = scmp.lt.s32.totalorder %s24_s21, %s24_s21 }
  0x11   :  { %p971_p5 = scmp.ne.s32.totalorder %s24_s21, %s970_s22  ;;  %p976_p7 = scmp.lt.s32.totalorder %s970_s22, %s970_s22 }
  0x13   :  { %p977_p8 = por %p976_p7, %p975_p6 }
  0x15   :  { %p978_p9 = pnand %p977_p8, %p971_p5 }
  0x17   :  { %981 = shalt.err (!%p978_p9)
}
  0x18   :  { %s1032_s23 = smov 128   ;;  %s1033_s24 = smov 8  }
  0x19   :  { %29 = dma.hbm_to_vmem [thread:$0]  %s1252_s0, 256, %s24_s21, [#allocation3], %s1032_s23, %s1032_s23, %s1033_s24  }
  0x1a   :  { %s1034_s1 = smov [#allocation7]  }
  0x1b   :  { %s47_s27 = sshll.u32 %s1034_s1, 4  ;;  %s48_s27 = int_to_ptr.vmem [resolvable:$true] %s47_s27 }
  0x1c   :  { %s990_s28 = scalar_lea.vmem %s48_s27, 256  ;;  %p995_p11 = scmp.lt.s32.totalorder %s48_s27, %s48_s27 }
  0x1d   :  { %p991_p10 = scmp.ne.s32.totalorder %s48_s27, %s990_s28  ;;  %p996_p12 = scmp.lt.s32.totalorder %s990_s28, %s990_s28 }
  0x1f   :  { %p997_p13 = por %p996_p12, %p995_p11 }
  0x21   :  { %p998_p0 = pnand %p997_p13, %p991_p10 }
  0x23   :  { %1001 = shalt.err (!%p998_p0)
}
  0x24   :  { %53 = dma.hbm_to_vmem [thread:$0]  %s1254_s2, 256, %s48_s27, [#allocation6], %s1029_s16, %s1029_s16, %s1030_s17  }
  0x25   :  { %1022 = dma.done.wait [#allocation3], 256  }
  0x26   :  { %1023 = vsyncadd [#allocation3], 4294967040 }
  0x27   :  { %1024 = dma.done.wait [#allocation6], 512  }
  0x28   :  { %1025 = vsyncadd [#allocation6], 4294966784  ;;  %v1035_v0 = vmov 0.0   ;;  %vm1036_vm0 = vmmov 0   ;;  %v890_v1 = vld [vmem:[#allocation7 + $0x8] sm:$0xff]   ;;  %v891_v2 = vld [vmem:[#allocation7] sm:$0xff]   ;;  %v89_v6 = vlaneseq }
  0x29   :  { %812 = vmatprep.subr.bf16.mxu0 %v1035_v0  ;;  %816 = vmatprep.mubr.msk.bf16.mxu0 %vm1036_vm0, %v1035_v0  ;;  %v78_v3 = vld [vmem:[#allocation2] sm:$0xff]  ;;  %v79_v4 = vld [vmem:[#allocation2 + $0x8] sm:$0xff]  ;;  %vm105_vm1 = vcmask 261120   ;;  %v892_v19 = vld [vmem:[%s1256_s4 + $0x38] sm:$0xff]   ;;  %vm487_vm2 = vcmask 523264  }
  0x2a   :  { %820 = vmatprep.subr.bf16.mxu1 %v1035_v0  ;;  %836 = vmatprep.mubr.msk.bf16.mxu1 %vm1036_vm0, %v1035_v0  ;;  %v1112_v5 = vpack.c.bf16 %v79_v4, %v78_v3  ;;  %v1119_v7 = vshrl.u32 %v89_v6, 7  ;;  %v81_v9 = vld [vmem:[%s1255_s3] sm:$0x7]  ;;  %v893_v20 = vld [vmem:[%s1256_s4 + $0x30] sm:$0xff]   ;;  %v894_v21 = vld [vmem:[%s1256_s4 + $0x28] sm:$0xff]  }
  0x2b   :  { %813 = vmatpush3.bf16.msra.mxu0 %v890_v1  ;;  %821 = vmatpush3.bf16.msra.mxu1 %v892_v19  ;;  %v895_v22 = vld [vmem:[%s1256_s4 + $0x20] sm:$0xff]   ;;  %v896_v23 = vld [vmem:[%s1256_s4 + $0x18] sm:$0xff]   ;;  %v897_v24 = vld [vmem:[%s1256_s4 + $0x10] sm:$0xff]  }
  0x2c   :  { %814 = vmatprep.subr.bf16.mxu0 %v1035_v0  ;;  %v1122_v8 = vsub.s32 0, %v1119_v7  ;;  %822 = vmatprep.subr.bf16.mxu1 %v1035_v0  ;;  %v898_v25 = vld [vmem:[%s1256_s4 + $0x8] sm:$0xff]   ;;  %v899_v26 = vld [vmem:[%s1256_s4] sm:$0xff]   ;;  %v1161_v43 = vsub.s32 1, %v1119_v7  ;;  %v1164_v44 = vsub.s32 2, %v1119_v7 }
  0x2e   :  { %v92_v10 = vrot.slane %v81_v9, %v1122_v8  ;;  %v182_v45 = vrot.slane %v81_v9, %v1161_v43  ;;  %v188_v48 = vrot.slane %v81_v9, %v1164_v44 }
  0x2f   :  { %815 = vmatpush3.bf16.msra.mxu0 %v891_v2  ;;  %823 = vmatpush3.bf16.msra.mxu1 %v893_v20 }
  0x30   :  { %840 = vmatprep.subr.bf16.mxu0 %v1035_v0  ;;  %824 = vmatprep.subr.bf16.mxu1 %v1035_v0 }
  0x32   :  { %817 = vmatmul.mubr.msk.bf16.vlgmr.msra.gmra.mxu0 %vm105_vm1, %v1112_v5 }
  0x33   :  { %856 = vmatprep.mubr.msk.bf16.mxu0 %vm1036_vm0, %v1035_v0  ;;  %825 = vmatpush3.bf16.msra.mxu1 %v894_v21 }
  0x34   :  { %826 = vmatprep.subr.bf16.mxu1 %v1035_v0 }
  0x37   :  { %827 = vmatpush3.bf16.msra.mxu1 %v895_v22 }
  0x38   :  { %828 = vmatprep.subr.bf16.mxu1 %v1035_v0 }
  0x3b   :  { %829 = vmatpush3.bf16.msra.mxu1 %v896_v23 }
  0x3c   :  { %830 = vmatprep.subr.bf16.mxu1 %v1035_v0 }
  0x3f   :  { %831 = vmatpush3.bf16.msra.mxu1 %v897_v24 }
  0x40   :  { %832 = vmatprep.subr.bf16.mxu1 %v1035_v0 }
  0x43   :  { %833 = vmatpush3.bf16.msra.mxu1 %v898_v25 }
  0x44   :  { %834 = vmatprep.subr.bf16.mxu1 %v1035_v0 }
  0x47   :  { %835 = vmatpush3.bf16.msra.mxu1 %v899_v26  ;;  %v900_v26 = vld [vmem:[%s1258_s6 + $0x38] sm:$0xff]  }
  0x48   :  { %860 = vmatprep.subr.bf16.mxu1 %v1035_v0  ;;  %841 = vmatpush3.bf16.msra.mxu0 %v900_v26 }
  0x49   :  { %842 = vmatprep.subr.bf16.mxu0 %v1035_v0 }
  0xf2   :  { %v143_v11 = vpop.f32.mrf.mxu0 }
  0xf3   :  { %v144_v12 = vadd.f32 %v143_v11, %v92_v10 }
  0xf4   :  { %v818_v13 = vpop.f32.mrf.mxu0 }
  0xf5   :  { %150 = vadd.xlane.f32.xlu0 %v144_v12  ;;  %v154_v14 = vmul.f32 %v144_v12, %v144_v12 }
  0xf6   :  { %v146_v15 = vpop.f32.mrf.mxu0 }
  0xf7   :  { %v147_v16 = vadd.f32 %v146_v15, %v92_v10  ;;  %156 = vadd.xlane.f32.xlu1 %v154_v14 }
  0xf8   :  { %v819_v17 = vpop.f32.mrf.mxu0 }
  0xf9   :  { %152 = vadd.xlane.f32.xlu0 %v147_v16  ;;  %v155_v18 = vmul.f32 %v147_v16, %v147_v16 }
  0xfb   :  { %158 = vadd.xlane.f32.xlu1 %v155_v18 }
 0x17e   :  { %v151_v27 = vpop.xlane.xlu0 %150 }
 0x17f   :  { %v161_v28 = vmul.f32 0.0078125, %v151_v27  ;;  %v901_v27 = vld [vmem:[%s1258_s6 + $0x30] sm:$0xff]  }
 0x180   :  { %v157_v29 = vpop.xlane.xlu1 %156  ;;  %843 = vmatpush3.bf16.msra.mxu0 %v901_v27 }
 0x181   :  { %v165_v30 = vmul.f32 %v161_v28, %v161_v28  ;;  %v163_v31 = vmul.f32 0.0078125, %v157_v29  ;;  %v171_v46 = vsub.f32 %v144_v12, %v161_v28  ;;  %v902_v28 = vld [vmem:[%s1258_s6 + $0x28] sm:$0xff]   ;;  %844 = vmatprep.subr.bf16.mxu0 %v1035_v0  ;;  %v903_v29 = vld [vmem:[%s1258_s6 + $0x20] sm:$0xff]  }
 0x182   :  { %v153_v32 = vpop.xlane.xlu0 %152 }
 0x183   :  { %v167_v33 = vsub.f32 %v163_v31, %v165_v30  ;;  %v162_v34 = vmul.f32 0.0078125, %v153_v32  ;;  %v904_v30 = vld [vmem:[%s1258_s6 + $0x18] sm:$0xff]   ;;  %v905_v31 = vld [vmem:[%s1258_s6 + $0x10] sm:$0xff]   ;;  %v906_v32 = vld [vmem:[%s1258_s6 + $0x8] sm:$0xff]  }
 0x184   :  { %v159_v35 = vpop.xlane.xlu1 %158  ;;  %845 = vmatpush3.bf16.msra.mxu0 %v902_v28 }
 0x185   :  { %v169_v36 = vmax.f32 %v167_v33, 0.0  ;;  %v166_v37 = vmul.f32 %v162_v34, %v162_v34  ;;  %v164_v38 = vmul.f32 0.0078125, %v159_v35  ;;  %v172_v51 = vsub.f32 %v147_v16, %v162_v34  ;;  %v82_v16 = vld [vmem:[%s1257_s5] sm:$0x7]  ;;  %846 = vmatprep.subr.bf16.mxu0 %v1035_v0 }
 0x186   :  { %v229_v17 = vrot.slane %v82_v16, %v1122_v8  ;;  %v907_v33 = vld [vmem:[%s1258_s6] sm:$0xff]  }
 0x187   :  { %v173_v39 = vadd.f32 1e-05, %v169_v36  ;;  %v168_v40 = vsub.f32 %v164_v38, %v166_v37 }
 0x188   :  { %847 = vmatpush3.bf16.msra.mxu0 %v903_v29 }
 0x189   :  { %914 = vrsqrt.f32 %v173_v39  ;;  %v170_v41 = vmax.f32 %v168_v40, 0.0  ;;  %848 = vmatprep.subr.bf16.mxu0 %v1035_v0 }
 0x18b   :  { %v174_v42 = vadd.f32 1e-05, %v170_v41 }
 0x18c   :  { %849 = vmatpush3.bf16.msra.mxu0 %v904_v30 }
 0x18d   :  { %916 = vrsqrt.f32 %v174_v42  ;;  %850 = vmatprep.subr.bf16.mxu0 %v1035_v0 }
 0x190   :  { %851 = vmatpush3.bf16.msra.mxu0 %v905_v31 }
 0x191   :  { %852 = vmatprep.subr.bf16.mxu0 %v1035_v0 }
 0x194   :  { %853 = vmatpush3.bf16.msra.mxu0 %v906_v32 }
 0x195   :  { %854 = vmatprep.subr.bf16.mxu0 %v1035_v0 }
 0x196   :  { %v915_v47 = vpop.eup %914 }
 0x197   :  { %v177_v49 = vmul.f32 %v915_v47, %v171_v46 }
 0x198   :  { %855 = vmatpush3.bf16.msra.mxu0 %v907_v33 }
 0x199   :  { %v183_v50 = vmul.f32 %v182_v45, %v177_v49  ;;  %872 = vmatprep.subr.bf16.mxu0 %v1035_v0 }
 0x19a   :  { %v917_v52 = vpop.eup %916 }
 0x19b   :  { %v178_v53 = vmul.f32 %v917_v52, %v172_v51  ;;  %v189_v54 = vadd.f32 %v188_v48, %v183_v50  ;;  %v350_v52 = vrot.slane %v82_v16, %v1161_v43 }
 0x19d   :  { %v184_v55 = vmul.f32 %v182_v45, %v178_v53  ;;  %v193_v56 = vmul.f32 0.044715, %v189_v54  ;;  %v191_v10 = vmul.f32 0.5, %v189_v54 }
 0x19f   :  { %v190_v57 = vadd.f32 %v188_v48, %v184_v55  ;;  %v195_v58 = vmul.f32 %v193_v56, %v189_v54  ;;  %v356_v55 = vrot.slane %v82_v16, %v1164_v44 }
 0x1a1   :  { %v194_v59 = vmul.f32 0.044715, %v190_v57  ;;  %v197_v60 = vmul.f32 %v195_v58, %v189_v54  ;;  %v192_v11 = vmul.f32 0.5, %v190_v57 }
 0x1a3   :  { %v196_v61 = vmul.f32 %v194_v59, %v190_v57  ;;  %v199_v62 = vadd.f32 %v197_v60, %v189_v54 }
 0x1a5   :  { %v198_v63 = vmul.f32 %v196_v61, %v190_v57  ;;  %v201_v1 = vmul.f32 0.7978846, %v199_v62 }
 0x1a7   :  { %v200_v2 = vadd.f32 %v198_v63, %v190_v57  ;;  %918 = vtanh.f32 %v201_v1 }
 0x1a9   :  { %v202_v3 = vmul.f32 0.7978846, %v200_v2 }
 0x1ab   :  { %920 = vtanh.f32 %v202_v3 }
 0x1b4   :  { %v919_v4 = vpop.eup %918 }
 0x1b5   :  { %v205_v6 = vadd.f32 1.0, %v919_v4 }
 0x1b7   :  { %v207_v13 = vmul.f32 %v205_v6, %v191_v10 }
 0x1b8   :  { %v921_v9 = vpop.eup %920 }
 0x1b9   :  { %v206_v12 = vadd.f32 1.0, %v921_v9 }
 0x1bb   :  { %v208_v14 = vmul.f32 %v206_v12, %v192_v11 }
 0x1bd   :  { %v209_v15 = vpack.c.bf16 %v208_v14, %v207_v13 }
 0x1bf   :  { %837 = vmatmul.mubr.bf16.vlgmr.msra.gmra.mxu1 %v209_v15 }
 0x1c0   :  { %868 = vmatprep.mubr.msk.bf16.mxu1 %vm1036_vm0, %v1035_v0 }
 0x27f   :  { %v312_v18 = vpop.f32.mrf.mxu1 }
 0x280   :  { %v313_v19 = vadd.f32 %v312_v18, %v229_v17 }
 0x281   :  { %v838_v20 = vpop.f32.mrf.mxu1 }
 0x282   :  { %319 = vadd.xlane.f32.xlu0 %v313_v19  ;;  %v323_v23 = vmul.f32 %v313_v19, %v313_v19 }
 0x283   :  { %v315_v21 = vpop.f32.mrf.mxu1 }
 0x284   :  { %v316_v22 = vadd.f32 %v315_v21, %v229_v17 }
 0x285   :  { %v839_v24 = vpop.f32.mrf.mxu1 }
 0x286   :  { %325 = vadd.xlane.f32.xlu0 %v323_v23  ;;  %321 = vadd.xlane.f32.xlu1 %v316_v22  ;;  %v324_v25 = vmul.f32 %v316_v22, %v316_v22  ;;  %v83_v23 = vld [vmem:[%s1259_s7] sm:$0x7] }
 0x287   :  { %v397_v24 = vrot.slane %v83_v23, %v1122_v8 }
 0x28a   :  { %327 = vadd.xlane.f32.xlu1 %v324_v25 }
 0x30b   :  { %v320_v34 = vpop.xlane.xlu0 %319 }
 0x30c   :  { %v329_v35 = vmul.f32 0.0078125, %v320_v34 }
 0x30e   :  { %v333_v38 = vmul.f32 %v329_v35, %v329_v35  ;;  %v339_v53 = vsub.f32 %v313_v19, %v329_v35 }
 0x30f   :  { %v326_v36 = vpop.xlane.xlu0 %325  ;;  %v322_v37 = vpop.xlane.xlu1 %321 }
 0x310   :  { %v331_v39 = vmul.f32 0.0078125, %v326_v36  ;;  %v330_v40 = vmul.f32 0.0078125, %v322_v37  ;;  %v908_v37 = vld [vmem:[%s1260_s8 + $0x18] sm:$0xff]  }
 0x311   :  { %861 = vmatpush3.bf16.msra.mxu1 %v908_v37 }
 0x312   :  { %v335_v41 = vsub.f32 %v331_v39, %v333_v38  ;;  %v334_v46 = vmul.f32 %v330_v40, %v330_v40  ;;  %v340_v58 = vsub.f32 %v316_v22, %v330_v40  ;;  %v909_v38 = vld [vmem:[%s1260_s8 + $0x10] sm:$0xff]   ;;  %862 = vmatprep.subr.bf16.mxu1 %v1035_v0  ;;  %v910_v39 = vld [vmem:[%s1260_s8 + $0x8] sm:$0xff]   ;;  %v911_v40 = vld [vmem:[%s1260_s8] sm:$0xff]  }
 0x313   :  { %v328_v42 = vpop.xlane.xlu1 %327 }
 0x314   :  { %v337_v45 = vmax.f32 %v335_v41, 0.0  ;;  %v332_v47 = vmul.f32 0.0078125, %v328_v42  ;;  %v912_v41 = vld [vmem:[#allocation5 + $0x8] sm:$0xff]   ;;  %v913_v42 = vld [vmem:[#allocation5] sm:$0xff]  }
 0x315   :  { %863 = vmatpush3.bf16.msra.mxu1 %v909_v38 }
 0x316   :  { %v341_v48 = vadd.f32 1e-05, %v337_v45  ;;  %v336_v49 = vsub.f32 %v332_v47, %v334_v46  ;;  %864 = vmatprep.subr.bf16.mxu1 %v1035_v0 }
 0x318   :  { %922 = vrsqrt.f32 %v341_v48  ;;  %v338_v50 = vmax.f32 %v336_v49, 0.0 }
 0x319   :  { %865 = vmatpush3.bf16.msra.mxu1 %v910_v39 }
 0x31a   :  { %v342_v51 = vadd.f32 1e-05, %v338_v50  ;;  %866 = vmatprep.subr.bf16.mxu1 %v1035_v0 }
 0x31c   :  { %924 = vrsqrt.f32 %v342_v51 }
 0x31d   :  { %867 = vmatpush3.bf16.msra.mxu1 %v911_v40 }
 0x325   :  { %v923_v54 = vpop.eup %922 }
 0x326   :  { %v345_v56 = vmul.f32 %v923_v54, %v339_v53 }
 0x328   :  { %v351_v57 = vmul.f32 %v350_v52, %v345_v56 }
 0x329   :  { %v925_v59 = vpop.eup %924 }
 0x32a   :  { %v357_v60 = vadd.f32 %v356_v55, %v351_v57  ;;  %v346_v61 = vmul.f32 %v925_v59, %v340_v58 }
 0x32c   :  { %v352_v62 = vmul.f32 %v350_v52, %v346_v61  ;;  %v361_v63 = vmul.f32 0.044715, %v357_v60  ;;  %v359_v17 = vmul.f32 0.5, %v357_v60 }
 0x32e   :  { %v358_v1 = vadd.f32 %v356_v55, %v352_v62  ;;  %v363_v2 = vmul.f32 %v361_v63, %v357_v60  ;;  %v530_v62 = vrot.slane %v83_v23, %v1164_v44 }
 0x330   :  { %v362_v3 = vmul.f32 0.044715, %v358_v1  ;;  %v365_v4 = vmul.f32 %v363_v2, %v357_v60  ;;  %v360_v18 = vmul.f32 0.5, %v358_v1 }
 0x332   :  { %v364_v6 = vmul.f32 %v362_v3, %v358_v1  ;;  %v367_v9 = vadd.f32 %v365_v4, %v357_v60 }
 0x334   :  { %v366_v10 = vmul.f32 %v364_v6, %v358_v1  ;;  %v369_v11 = vmul.f32 0.7978846, %v367_v9 }
 0x336   :  { %v368_v12 = vadd.f32 %v366_v10, %v358_v1  ;;  %926 = vtanh.f32 %v369_v11 }
 0x338   :  { %v370_v13 = vmul.f32 0.7978846, %v368_v12 }
 0x33a   :  { %928 = vtanh.f32 %v370_v13 }
 0x343   :  { %v927_v14 = vpop.eup %926 }
 0x344   :  { %v373_v15 = vadd.f32 1.0, %v927_v14 }
 0x346   :  { %v375_v20 = vmul.f32 %v373_v15, %v359_v17 }
 0x347   :  { %v929_v16 = vpop.eup %928 }
 0x348   :  { %v374_v19 = vadd.f32 1.0, %v929_v16 }
 0x34a   :  { %v376_v21 = vmul.f32 %v374_v19, %v360_v18 }
 0x34c   :  { %v377_v22 = vpack.c.bf16 %v376_v21, %v375_v20 }
 0x34e   :  { %857 = vmatmul.mubr.bf16.vlgmr.msra.gmra.mxu0 %v377_v22 }
 0x34f   :  { %876 = vmatprep.mubr.msk.bf16.mxu0 %vm1036_vm0, %v1035_v0  ;;  %873 = vmatpush3.bf16.msra.mxu0 %v912_v41 }
 0x350   :  { %874 = vmatprep.subr.bf16.mxu0 %v1035_v0 }
 0x353   :  { %875 = vmatpush3.bf16.msra.mxu0 %v913_v42 }
 0x356   :  { %877 = vmatmul.mubr.msk.bf16.vlgmr.msra.gmra.mxu0 %vm105_vm1, %v1112_v5  ;;  %v524_v5 = vrot.slane %v83_v23, %v1161_v43 }
 0x40e   :  { %v480_v25 = vpop.f32.mrf.mxu0 }
 0x40f   :  { %v481_v26 = vadd.f32 %v480_v25, %v397_v24 }
 0x410   :  { %v858_v27 = vpop.f32.mrf.mxu0 }
 0x411   :  { %v488_v28 = vsel %vm487_vm2, %v481_v26, 0.0  ;;  %v494_v29 = vmul.f32 %v481_v26, %v481_v26 }
 0x412   :  { %489 = vadd.xlane.f32.xlu0 %v488_v28  ;;  %v483_v30 = vpop.f32.mrf.mxu0 }
 0x413   :  { %v484_v31 = vadd.f32 %v483_v30, %v397_v24  ;;  %v496_v33 = vsel %vm487_vm2, %v494_v29, 0.0  ;;  %v84_v30 = vld [vmem:[%s1261_s9] sm:$0xf]  ;;  %s1037_s9 = smov [#allocation8]  }
 0x414   :  { %v859_v32 = vpop.f32.mrf.mxu0  ;;  %s743_s29 = sshll.u32 %s1037_s9, 4  ;;  %s744_s29 = int_to_ptr.vmem [resolvable:$true] %s743_s29 }
 0x415   :  { %v491_v34 = vsel %vm487_vm2, %v484_v31, 0.0  ;;  %v495_v35 = vmul.f32 %v484_v31, %v484_v31  ;;  %s1002_s5 = scalar_lea.vmem %s744_s29, 256  ;;  %p1007_p2 = scmp.lt.s32.totalorder %s744_s29, %s744_s29 }
 0x416   :  { %497 = vadd.xlane.f32.xlu0 %v496_v33  ;;  %492 = vadd.xlane.f32.xlu1 %v491_v34  ;;  %v727_v40 = vpop.f32.mrf.mxu0  ;;  %p1003_p1 = scmp.ne.s32.totalorder %s744_s29, %s1002_s5  ;;  %p1008_p3 = scmp.lt.s32.totalorder %s1002_s5, %s1002_s5 }
 0x417   :  { %v499_v36 = vsel %vm487_vm2, %v495_v35, 0.0 }
 0x418   :  { %v878_v41 = vpop.f32.mrf.mxu0  ;;  %p1009_p4 = por %p1008_p3, %p1007_p2 }
 0x41a   :  { %500 = vadd.xlane.f32.xlu1 %v499_v36  ;;  %v730_v42 = vpop.f32.mrf.mxu0  ;;  %p1010_p5 = pnand %p1009_p4, %p1003_p1 }
 0x49b   :  { %v490_v45 = vpop.xlane.xlu0 %489 }
 0x49c   :  { %v503_v46 = vmul.f32 0.015625, %v490_v45  ;;  %v879_v45 = vpop.f32.mrf.mxu0 }
 0x49e   :  { %v507_v49 = vmul.f32 %v503_v46, %v503_v46  ;;  %v513_v60 = vsub.f32 %v481_v26, %v503_v46 }
 0x49f   :  { %v498_v47 = vpop.xlane.xlu0 %497  ;;  %v493_v48 = vpop.xlane.xlu1 %492 }
 0x4a0   :  { %v505_v50 = vmul.f32 0.015625, %v498_v47  ;;  %v504_v51 = vmul.f32 0.015625, %v493_v48 }
 0x4a2   :  { %v509_v52 = vsub.f32 %v505_v50, %v507_v49  ;;  %v508_v55 = vmul.f32 %v504_v51, %v504_v51  ;;  %v514_v2 = vsub.f32 %v484_v31, %v504_v51  ;;  %v563_v31 = vrot.slane %v84_v30, %v1161_v43 }
 0x4a3   :  { %v501_v53 = vpop.xlane.xlu1 %500 }
 0x4a4   :  { %v511_v54 = vmax.f32 %v509_v52, 0.0  ;;  %v506_v56 = vmul.f32 0.015625, %v501_v53 }
 0x4a6   :  { %v515_v57 = vadd.f32 1e-05, %v511_v54  ;;  %v510_v58 = vsub.f32 %v506_v56, %v508_v55 }
 0x4a8   :  { %930 = vrsqrt.f32 %v515_v57  ;;  %v512_v0 = vmax.f32 %v510_v58, 0.0 }
 0x4aa   :  { %v516_v59 = vadd.f32 1e-05, %v512_v0 }
 0x4ac   :  { %932 = vrsqrt.f32 %v516_v59 }
 0x4b5   :  { %v931_v61 = vpop.eup %930 }
 0x4b6   :  { %v519_v63 = vmul.f32 %v931_v61, %v513_v60  ;;  %v664_v61 = vrot.slane %v84_v30, %v1164_v44 }
 0x4b8   :  { %v525_v1 = vmul.f32 %v524_v5, %v519_v63 }
 0x4b9   :  { %v933_v3 = vpop.eup %932 }
 0x4ba   :  { %v531_v4 = vadd.f32 %v530_v62, %v525_v1  ;;  %v520_v6 = vmul.f32 %v933_v3, %v514_v2 }
 0x4bc   :  { %v526_v9 = vmul.f32 %v524_v5, %v520_v6  ;;  %v535_v10 = vmul.f32 0.044715, %v531_v4  ;;  %v533_v24 = vmul.f32 0.5, %v531_v4  ;;  %v669_v5 = vsub.s32 3, %v1119_v7 }
 0x4be   :  { %v532_v11 = vadd.f32 %v530_v62, %v526_v9  ;;  %v537_v12 = vmul.f32 %v535_v10, %v531_v4  ;;  %v680_v62 = vrot.slane %v84_v30, %v1122_v8  ;;  %v670_v2 = vrot.slane %v84_v30, %v669_v5 }
 0x4c0   :  { %v536_v13 = vmul.f32 0.044715, %v532_v11  ;;  %v539_v14 = vmul.f32 %v537_v12, %v531_v4  ;;  %v534_v25 = vmul.f32 0.5, %v532_v11  ;;  %v728_v6 = vadd.f32 %v727_v40, %v680_v62 }
 0x4c2   :  { %v538_v15 = vmul.f32 %v536_v13, %v532_v11  ;;  %v541_v16 = vadd.f32 %v539_v14, %v531_v4  ;;  %v731_v14 = vadd.f32 %v730_v42, %v680_v62 }
 0x4c4   :  { %v540_v17 = vmul.f32 %v538_v15, %v532_v11  ;;  %v543_v18 = vmul.f32 0.7978846, %v541_v16 }
 0x4c6   :  { %v542_v19 = vadd.f32 %v540_v17, %v532_v11  ;;  %934 = vtanh.f32 %v543_v18 }
 0x4c8   :  { %v544_v20 = vmul.f32 0.7978846, %v542_v19 }
 0x4ca   :  { %936 = vtanh.f32 %v544_v20 }
 0x4d3   :  { %v935_v21 = vpop.eup %934 }
 0x4d4   :  { %v547_v22 = vadd.f32 1.0, %v935_v21 }
 0x4d6   :  { %v549_v27 = vmul.f32 %v547_v22, %v533_v24 }
 0x4d7   :  { %v937_v23 = vpop.eup %936 }
 0x4d8   :  { %v548_v26 = vadd.f32 1.0, %v937_v23 }
 0x4da   :  { %v550_v28 = vmul.f32 %v548_v26, %v534_v25 }
 0x4dc   :  { %v551_v29 = vpack.c.bf16 %v550_v28, %v549_v27 }
 0x4de   :  { %869 = vmatmul.mubr.msk.bf16.vlgmr.msra.gmra.mxu1 %vm487_vm2, %v551_v29 }
 0x59e   :  { %v625_v32 = vpop.f32.mrf.mxu1 }
 0x59f   :  { %v626_v33 = vadd.f32 %v625_v32, %v563_v31 }
 0x5a0   :  { %v870_v34 = vpop.f32.mrf.mxu1 }
 0x5a1   :  { %632 = vadd.xlane.f32.xlu0 %v626_v33  ;;  %v636_v37 = vmul.f32 %v626_v33, %v626_v33 }
 0x5a2   :  { %v628_v35 = vpop.f32.mrf.mxu1 }
 0x5a3   :  { %v629_v36 = vadd.f32 %v628_v35, %v563_v31 }
 0x5a4   :  { %v871_v38 = vpop.f32.mrf.mxu1 }
 0x5a5   :  { %638 = vadd.xlane.f32.xlu0 %v636_v37  ;;  %634 = vadd.xlane.f32.xlu1 %v629_v36  ;;  %v637_v39 = vmul.f32 %v629_v36, %v629_v36 }
 0x5a9   :  { %640 = vadd.xlane.f32.xlu1 %v637_v39 }
 0x62a   :  { %v633_v46 = vpop.xlane.xlu0 %632 }
 0x62b   :  { %v643_v47 = vmul.f32 0.03125, %v633_v46 }
 0x62d   :  { %v647_v49 = vmul.f32 %v643_v47, %v643_v47  ;;  %v653_v60 = vsub.f32 %v626_v33, %v643_v47 }
 0x62e   :  { %v639_v48 = vpop.xlane.xlu0 %638  ;;  %v635_v43 = vpop.xlane.xlu1 %634 }
 0x62f   :  { %v645_v50 = vmul.f32 0.03125, %v639_v48  ;;  %v644_v51 = vmul.f32 0.03125, %v635_v43 }
 0x631   :  { %v649_v52 = vsub.f32 %v645_v50, %v647_v49  ;;  %v648_v55 = vmul.f32 %v644_v51, %v644_v51  ;;  %v654_v3 = vsub.f32 %v629_v36, %v644_v51 }
 0x632   :  { %v641_v53 = vpop.xlane.xlu1 %640 }
 0x633   :  { %v651_v54 = vmax.f32 %v649_v52, 0.0  ;;  %v646_v56 = vmul.f32 0.03125, %v641_v53 }
 0x635   :  { %v655_v57 = vadd.f32 1e-05, %v651_v54  ;;  %v650_v58 = vsub.f32 %v646_v56, %v648_v55 }
 0x637   :  { %938 = vrsqrt.f32 %v655_v57  ;;  %v652_v0 = vmax.f32 %v650_v58, 0.0 }
 0x639   :  { %v656_v59 = vadd.f32 1e-05, %v652_v0 }
 0x63b   :  { %940 = vrsqrt.f32 %v656_v59 }
 0x644   :  { %v939_v63 = vpop.eup %938 }
 0x645   :  { %v659_v1 = vmul.f32 %v939_v63, %v653_v60 }
 0x647   :  { %v665_v4 = vmul.f32 %v664_v61, %v659_v1 }
 0x648   :  { %v941_v9 = vpop.eup %940 }
 0x649   :  { %v671_v10 = vadd.f32 %v670_v2, %v665_v4  ;;  %v660_v11 = vmul.f32 %v941_v9, %v654_v3 }
 0x64b   :  { %v734_v12 = vadd.f32 %v728_v6, %v671_v10  ;;  %v666_v13 = vmul.f32 %v664_v61, %v660_v11 }
 0x64d   :  { %736 = vst [vmem:[#allocation8] sm:$0xff] %v734_v12  ;;  %v672_v7 = vadd.f32 %v670_v2, %v666_v13 }
 0x64f   :  { %v735_v15 = vadd.f32 %v731_v14, %v672_v7 }
 0x651   :  { %737 = vst [vmem:[#allocation8 + $0x8] sm:$0xff] %v735_v15 }
 0x652   :  { %1013 = shalt.err (!%p1010_p5)
}
 0x653   :  { %749 = dma.vmem_to_hbm [thread:$0]  %s744_s29, 256, %s1262_s10, [#allocation4], %s1032_s23, %s1032_s23, %s1033_s24  }
 0x654   :  { %1026 = dma.done.wait [#allocation4], 256  }
 0x655   :  { %1027 = vsyncadd [#allocation4], 4294967040 }
 0x656   :  { %753 = vsyncpa [#allocation3], 1 }
 0x657   :  { %754 = vsyncpa [#allocation6], 1 }
 0x658   :  { %755 = vsyncpa [#allocation4], 1 }

// kernel: tpu_custom_call.1
= control target key start
LH: loop header
LB: loop body
LE: loop exit
PB: predicated region body
PF: predicated region fallthrough
CT: control target
= control target key end

     0   :  { %15 = vsyncpa [#allocation3], 0  ;;  %s1252_s0 = inlined_call_operand.hbm [shape: f32[16,32], index: 0, kind: input, shape index: {}]   ;;  %s1253_s1 = inlined_call_operand.hbm [shape: bf16[32,128], index: 1, kind: input, shape index: {}]   ;;  %s1254_s2 = inlined_call_operand.hbm [shape: bf16[32,128], index: 2, kind: input, shape index: {}]   ;;  %s1255_s3 = inlined_call_operand.vmem [shape: f32[3,128], index: 3, kind: input, shape index: {}]   ;;  %s1256_s4 = inlined_call_operand.vmem [shape: bf16[128,128], index: 4, kind: input, shape index: {}]   ;;  %s1257_s5 = inlined_call_operand.vmem [shape: f32[3,128], index: 5, kind: input, shape index: {}]   ;;  %s1258_s6 = inlined_call_operand.vmem [shape: bf16[128,64], index: 6, kind: input, shape index: {}]   ;;  %s1259_s7 = inlined_call_operand.vmem [shape: f32[3,64], index: 7, kind: input, shape index: {}]   ;;  %s1260_s8 = inlined_call_operand.vmem [shape: bf16[64,128], index: 8, kind: input, shape index: {}]   ;;  %s1261_s9 = inlined_call_operand.vmem [shape: f32[4,128], index: 9, kind: input, shape index: {}]   ;;  %s1262_s10 = inlined_call_operand.hbm [shape: f32[16,128], index: 10, kind: output, shape index: {}]  }
   0x1   :  { %16 = vsyncpa [#allocation6], 0 }
   0x2   :  { %17 = vsyncpa [#allocation4], 0  ;;  %s1028_s13 = smov [#allocation5]  }
   0x3   :  { %s35_s14 = sshll.u32 %s1028_s13, 4  ;;  %s36_s14 = int_to_ptr.vmem [resolvable:$true] %s35_s14 }
   0x4   :  { %s950_s15 = scalar_lea.vmem %s36_s14, 256  ;;  %p955_p1 = scmp.lt.s32.totalorder %s36_s14, %s36_s14 }
   0x5   :  { %p951_p0 = scmp.ne.s32.totalorder %s36_s14, %s950_s15  ;;  %p956_p2 = scmp.lt.s32.totalorder %s950_s15, %s950_s15 }
   0x7   :  { %p957_p3 = por %p956_p2, %p955_p1 }
   0x9   :  { %p958_p4 = pnand %p957_p3, %p951_p0 }
   0xb   :  { %961 = shalt.err (!%p958_p4)
}
   0xc   :  { %s1029_s16 = smov 64   ;;  %s1030_s17 = smov 4  }
   0xd   :  { %41 = dma.hbm_to_vmem [thread:$0]  %s1253_s1, 256, %s36_s14, [#allocation6], %s1029_s16, %s1029_s16, %s1030_s17  }
   0xe   :  { %s1031_s20 = smov [#allocation2]  }
   0xf   :  { %s23_s21 = sshll.u32 %s1031_s20, 4  ;;  %s24_s21 = int_to_ptr.vmem [resolvable:$true] %s23_s21 }
  0x10   :  { %s970_s22 = scalar_lea.vmem %s24_s21, 256  ;;  %p975_p6 = scmp.lt.s32.totalorder %s24_s21, %s24_s21 }
  0x11   :  { %p971_p5 = scmp.ne.s32.totalorder %s24_s21, %s970_s22  ;;  %p976_p7 = scmp.lt.s32.totalorder %s970_s22, %s970_s22 }
  0x13   :  { %p977_p8 = por %p976_p7, %p975_p6 }
  0x15   :  { %p978_p9 = pnand %p977_p8, %p971_p5 }
  0x17   :  { %981 = shalt.err (!%p978_p9)
}
  0x18   :  { %s1032_s23 = smov 128   ;;  %s1033_s24 = smov 8  }
  0x19   :  { %29 = dma.hbm_to_vmem [thread:$0]  %s1252_s0, 256, %s24_s21, [#allocation3], %s1032_s23, %s1032_s23, %s1033_s24  }
  0x1a   :  { %s1034_s1 = smov [#allocation7]  }
  0x1b   :  { %s47_s27 = sshll.u32 %s1034_s1, 4  ;;  %s48_s27 = int_to_ptr.vmem [resolvable:$true] %s47_s27 }
  0x1c   :  { %s990_s28 = scalar_lea.vmem %s48_s27, 256  ;;  %p995_p11 = scmp.lt.s32.totalorder %s48_s27, %s48_s27 }
  0x1d   :  { %p991_p10 = scmp.ne.s32.totalorder %s48_s27, %s990_s28  ;;  %p996_p12 = scmp.lt.s32.totalorder %s990_s28, %s990_s28 }
  0x1f   :  { %p997_p13 = por %p996_p12, %p995_p11 }
  0x21   :  { %p998_p0 = pnand %p997_p13, %p991_p10 }
  0x23   :  { %1001 = shalt.err (!%p998_p0)
}
  0x24   :  { %53 = dma.hbm_to_vmem [thread:$0]  %s1254_s2, 256, %s48_s27, [#allocation6], %s1029_s16, %s1029_s16, %s1030_s17  }
  0x25   :  { %1022 = dma.done.wait [#allocation3], 256  }
  0x26   :  { %1023 = vsyncadd [#allocation3], 4294967040 }
  0x27   :  { %1024 = dma.done.wait [#allocation6], 512  }
  0x28   :  { %1025 = vsyncadd [#allocation6], 4294966784  ;;  %v1035_v0 = vmov 0.0   ;;  %vm1036_vm0 = vmmov 0   ;;  %v890_v1 = vld [vmem:[#allocation7 + $0x8] sm:$0xff]   ;;  %v891_v2 = vld [vmem:[#allocation7] sm:$0xff]   ;;  %v89_v6 = vlaneseq }
  0x29   :  { %812 = vmatprep.subr.bf16.mxu0 %v1035_v0  ;;  %816 = vmatprep.mubr.msk.bf16.mxu0 %vm1036_vm0, %v1035_v0  ;;  %v78_v3 = vld [vmem:[#allocation2] sm:$0xff]  ;;  %v79_v4 = vld [vmem:[#allocation2 + $0x8] sm:$0xff]  ;;  %vm105_vm1 = vcmask 261120   ;;  %v892_v19 = vld [vmem:[%s1256_s4 + $0x38] sm:$0xff]   ;;  %vm487_vm2 = vcmask 523264  }
  0x2a   :  { %820 = vmatprep.subr.bf16.mxu1 %v1035_v0  ;;  %836 = vmatprep.mubr.msk.bf16.mxu1 %vm1036_vm0, %v1035_v0  ;;  %v1112_v5 = vpack.c.bf16 %v79_v4, %v78_v3  ;;  %v1119_v7 = vshrl.u32 %v89_v6, 7  ;;  %v81_v9 = vld [vmem:[%s1255_s3] sm:$0x7]  ;;  %v893_v20 = vld [vmem:[%s1256_s4 + $0x30] sm:$0xff]   ;;  %v894_v21 = vld [vmem:[%s1256_s4 + $0x28] sm:$0xff]  }
  0x2b   :  { %813 = vmatpush3.bf16.msra.mxu0 %v890_v1  ;;  %821 = vmatpush3.bf16.msra.mxu1 %v892_v19  ;;  %v895_v22 = vld [vmem:[%s1256_s4 + $0x20] sm:$0xff]   ;;  %v896_v23 = vld [vmem:[%s1256_s4 + $0x18] sm:$0xff]   ;;  %v897_v24 = vld [vmem:[%s1256_s4 + $0x10] sm:$0xff]  }
  0x2c   :  { %814 = vmatprep.subr.bf16.mxu0 %v1035_v0  ;;  %v1122_v8 = vsub.s32 0, %v1119_v7  ;;  %822 = vmatprep.subr.bf16.mxu1 %v1035_v0  ;;  %v898_v25 = vld [vmem:[%s1256_s4 + $0x8] sm:$0xff]   ;;  %v899_v26 = vld [vmem:[%s1256_s4] sm:$0xff]   ;;  %v1161_v43 = vsub.s32 1, %v1119_v7  ;;  %v1164_v44 = vsub.s32 2, %v1119_v7 }
  0x2e   :  { %v92_v10 = vrot.slane %v81_v9, %v1122_v8  ;;  %v182_v45 = vrot.slane %v81_v9, %v1161_v43  ;;  %v188_v48 = vrot.slane %v81_v9, %v1164_v44 }
  0x2f   :  { %815 = vmatpush3.bf16.msra.mxu0 %v891_v2  ;;  %823 = vmatpush3.bf16.msra.mxu1 %v893_v20 }
  0x30   :  { %840 = vmatprep.subr.bf16.mxu0 %v1035_v0  ;;  %824 = vmatprep.subr.bf16.mxu1 %v1035_v0 }
  0x32   :  { %817 = vmatmul.mubr.msk.bf16.vlgmr.msra.gmra.mxu0 %vm105_vm1, %v1112_v5 }
  0x33   :  { %856 = vmatprep.mubr.msk.bf16.mxu0 %vm1036_vm0, %v1035_v0  ;;  %825 = vmatpush3.bf16.msra.mxu1 %v894_v21 }
  0x34   :  { %826 = vmatprep.subr.bf16.mxu1 %v1035_v0 }
  0x37   :  { %827 = vmatpush3.bf16.msra.mxu1 %v895_v22 }
  0x38   :  { %828 = vmatprep.subr.bf16.mxu1 %v1035_v0 }
  0x3b   :  { %829 = vmatpush3.bf16.msra.mxu1 %v896_v23 }
  0x3c   :  { %830 = vmatprep.subr.bf16.mxu1 %v1035_v0 }
  0x3f   :  { %831 = vmatpush3.bf16.msra.mxu1 %v897_v24 }
  0x40   :  { %832 = vmatprep.subr.bf16.mxu1 %v1035_v0 }
  0x43   :  { %833 = vmatpush3.bf16.msra.mxu1 %v898_v25 }
  0x44   :  { %834 = vmatprep.subr.bf16.mxu1 %v1035_v0 }
  0x47   :  { %835 = vmatpush3.bf16.msra.mxu1 %v899_v26  ;;  %v900_v26 = vld [vmem:[%s1258_s6 + $0x38] sm:$0xff]  }
  0x48   :  { %860 = vmatprep.subr.bf16.mxu1 %v1035_v0  ;;  %841 = vmatpush3.bf16.msra.mxu0 %v900_v26 }
  0x49   :  { %842 = vmatprep.subr.bf16.mxu0 %v1035_v0 }
  0xf2   :  { %v143_v11 = vpop.f32.mrf.mxu0 }
  0xf3   :  { %v144_v12 = vadd.f32 %v143_v11, %v92_v10 }
  0xf4   :  { %v818_v13 = vpop.f32.mrf.mxu0 }
  0xf5   :  { %150 = vadd.xlane.f32.xlu0 %v144_v12  ;;  %v154_v14 = vmul.f32 %v144_v12, %v144_v12 }
  0xf6   :  { %v146_v15 = vpop.f32.mrf.mxu0 }
  0xf7   :  { %v147_v16 = vadd.f32 %v146_v15, %v92_v10  ;;  %156 = vadd.xlane.f32.xlu1 %v154_v14 }
  0xf8   :  { %v819_v17 = vpop.f32.mrf.mxu0 }
  0xf9   :  { %152 = vadd.xlane.f32.xlu0 %v147_v16  ;;  %v155_v18 = vmul.f32 %v147_v16, %v147_v16 }
  0xfb   :  { %158 = vadd.xlane.f32.xlu1 %v155_v18 }
 0x17e   :  { %v151_v27 = vpop.xlane.xlu0 %150 }
 0x17f   :  { %v161_v28 = vmul.f32 0.0078125, %v151_v27  ;;  %v901_v27 = vld [vmem:[%s1258_s6 + $0x30] sm:$0xff]  }
 0x180   :  { %v157_v29 = vpop.xlane.xlu1 %156  ;;  %843 = vmatpush3.bf16.msra.mxu0 %v901_v27 }
 0x181   :  { %v165_v30 = vmul.f32 %v161_v28, %v161_v28  ;;  %v163_v31 = vmul.f32 0.0078125, %v157_v29  ;;  %v171_v46 = vsub.f32 %v144_v12, %v161_v28  ;;  %v902_v28 = vld [vmem:[%s1258_s6 + $0x28] sm:$0xff]   ;;  %844 = vmatprep.subr.bf16.mxu0 %v1035_v0  ;;  %v903_v29 = vld [vmem:[%s1258_s6 + $0x20] sm:$0xff]  }
 0x182   :  { %v153_v32 = vpop.xlane.xlu0 %152 }
 0x183   :  { %v167_v33 = vsub.f32 %v163_v31, %v165_v30  ;;  %v162_v34 = vmul.f32 0.0078125, %v153_v32  ;;  %v904_v30 = vld [vmem:[%s1258_s6 + $0x18] sm:$0xff]   ;;  %v905_v31 = vld [vmem:[%s1258_s6 + $0x10] sm:$0xff]   ;;  %v906_v32 = vld [vmem:[%s1258_s6 + $0x8] sm:$0xff]  }
 0x184   :  { %v159_v35 = vpop.xlane.xlu1 %158  ;;  %845 = vmatpush3.bf16.msra.mxu0 %v902_v28 }
 0x185   :  { %v169_v36 = vmax.f32 %v167_v33, 0.0  ;;  %v166_v37 = vmul.f32 %v162_v34, %v162_v34  ;;  %v164_v38 = vmul.f32 0.0078125, %v159_v35  ;;  %v172_v51 = vsub.f32 %v147_v16, %v162_v34  ;;  %v82_v16 = vld [vmem:[%s1257_s5] sm:$0x7]  ;;  %846 = vmatprep.subr.bf16.mxu0 %v1035_v0 }
 0x186   :  { %v229_v17 = vrot.slane %v82_v16, %v1122_v8  ;;  %v907_v33 = vld [vmem:[%s1258_s6] sm:$0xff]  }
 0x187   :  { %v173_v39 = vadd.f32 1e-05, %v169_v36  ;;  %v168_v40 = vsub.f32 %v164_v38, %v166_v37 }
 0x188   :  { %847 = vmatpush3.bf16.msra.mxu0 %v903_v29 }
 0x189   :  { %914 = vrsqrt.f32 %v173_v39  ;;  %v170_v41 = vmax.f32 %v168_v40, 0.0  ;;  %848 = vmatprep.subr.bf16.mxu0 %v1035_v0 }
 0x18b   :  { %v174_v42 = vadd.f32 1e-05, %v170_v41 }
 0x18c   :  { %849 = vmatpush3.bf16.msra.mxu0 %v904_v30 }
 0x18d   :  { %916 = vrsqrt.f32 %v174_v42  ;;  %850 = vmatprep.subr.bf16.mxu0 %v1035_v0 }
 0x190   :  { %851 = vmatpush3.bf16.msra.mxu0 %v905_v31 }
 0x191   :  { %852 = vmatprep.subr.bf16.mxu0 %v1035_v0 }
 0x194   :  { %853 = vmatpush3.bf16.msra.mxu0 %v906_v32 }
 0x195   :  { %854 = vmatprep.subr.bf16.mxu0 %v1035_v0 }
 0x196   :  { %v915_v47 = vpop.eup %914 }
 0x197   :  { %v177_v49 = vmul.f32 %v915_v47, %v171_v46 }
 0x198   :  { %855 = vmatpush3.bf16.msra.mxu0 %v907_v33 }
 0x199   :  { %v183_v50 = vmul.f32 %v182_v45, %v177_v49  ;;  %872 = vmatprep.subr.bf16.mxu0 %v1035_v0 }
 0x19a   :  { %v917_v52 = vpop.eup %916 }
 0x19b   :  { %v178_v53 = vmul.f32 %v917_v52, %v172_v51  ;;  %v189_v54 = vadd.f32 %v188_v48, %v183_v50  ;;  %v350_v52 = vrot.slane %v82_v16, %v1161_v43 }
 0x19d   :  { %v184_v55 = vmul.f32 %v182_v45, %v178_v53  ;;  %v193_v56 = vmul.f32 0.044715, %v189_v54  ;;  %v191_v10 = vmul.f32 0.5, %v189_v54 }
 0x19f   :  { %v190_v57 = vadd.f32 %v188_v48, %v184_v55  ;;  %v195_v58 = vmul.f32 %v193_v56, %v189_v54  ;;  %v356_v55 = vrot.slane %v82_v16, %v1164_v44 }
 0x1a1   :  { %v194_v59 = vmul.f32 0.044715, %v190_v57  ;;  %v197_v60 = vmul.f32 %v195_v58, %v189_v54  ;;  %v192_v11 = vmul.f32 0.5, %v190_v57 }
 0x1a3   :  { %v196_v61 = vmul.f32 %v194_v59, %v190_v57  ;;  %v199_v62 = vadd.f32 %v197_v60, %v189_v54 }
 0x1a5   :  { %v198_v63 = vmul.f32 %v196_v61, %v190_v57  ;;  %v201_v1 = vmul.f32 0.7978846, %v199_v62 }
 0x1a7   :  { %v200_v2 = vadd.f32 %v198_v63, %v190_v57  ;;  %918 = vtanh.f32 %v201_v1 }
 0x1a9   :  { %v202_v3 = vmul.f32 0.7978846, %v200_v2 }
 0x1ab   :  { %920 = vtanh.f32 %v202_v3 }
 0x1b4   :  { %v919_v4 = vpop.eup %918 }
 0x1b5   :  { %v205_v6 = vadd.f32 1.0, %v919_v4 }
 0x1b7   :  { %v207_v13 = vmul.f32 %v205_v6, %v191_v10 }
 0x1b8   :  { %v921_v9 = vpop.eup %920 }
 0x1b9   :  { %v206_v12 = vadd.f32 1.0, %v921_v9 }
 0x1bb   :  { %v208_v14 = vmul.f32 %v206_v12, %v192_v11 }
 0x1bd   :  { %v209_v15 = vpack.c.bf16 %v208_v14, %v207_v13 }
 0x1bf   :  { %837 = vmatmul.mubr.bf16.vlgmr.msra.gmra.mxu1 %v209_v15 }
 0x1c0   :  { %868 = vmatprep.mubr.msk.bf16.mxu1 %vm1036_vm0, %v1035_v0 }
 0x27f   :  { %v312_v18 = vpop.f32.mrf.mxu1 }
 0x280   :  { %v313_v19 = vadd.f32 %v312_v18, %v229_v17 }
 0x281   :  { %v838_v20 = vpop.f32.mrf.mxu1 }
 0x282   :  { %319 = vadd.xlane.f32.xlu0 %v313_v19  ;;  %v323_v23 = vmul.f32 %v313_v19, %v313_v19 }
 0x283   :  { %v315_v21 = vpop.f32.mrf.mxu1 }
 0x284   :  { %v316_v22 = vadd.f32 %v315_v21, %v229_v17 }
 0x285   :  { %v839_v24 = vpop.f32.mrf.mxu1 }
 0x286   :  { %325 = vadd.xlane.f32.xlu0 %v323_v23  ;;  %321 = vadd.xlane.f32.xlu1 %v316_v22  ;;  %v324_v25 = vmul.f32 %v316_v22, %v316_v22  ;;  %v83_v23 = vld [vmem:[%s1259_s7] sm:$0x7] }
 0x287   :  { %v397_v24 = vrot.slane %v83_v23, %v1122_v8 }
 0x28a   :  { %327 = vadd.xlane.f32.xlu1 %v324_v25 }
 0x30b   :  { %v320_v34 = vpop.xlane.xlu0 %319 }
 0x30c   :  { %v329_v35 = vmul.f32 0.0078125, %v320_v34 }
 0x30e   :  { %v333_v38 = vmul.f32 %v329_v35, %v329_v35  ;;  %v339_v53 = vsub.f32 %v313_v19, %v329_v35 }
 0x30f   :  { %v326_v36 = vpop.xlane.xlu0 %325  ;;  %v322_v37 = vpop.xlane.xlu1 %321 }
 0x310   :  { %v331_v39 = vmul.f32 0.0078125, %v326_v36  ;;  %v330_v40 = vmul.f32 0.0078125, %v322_v37  ;;  %v908_v37 = vld [vmem:[%s1260_s8 + $0x18] sm:$0xff]  }
 0x311   :  { %861 = vmatpush3.bf16.msra.mxu1 %v908_v37 }
 0x312   :  { %v335_v41 = vsub.f32 %v331_v39, %v333_v38  ;;  %v334_v46 = vmul.f32 %v330_v40, %v330_v40  ;;  %v340_v58 = vsub.f32 %v316_v22, %v330_v40  ;;  %v909_v38 = vld [vmem:[%s1260_s8 + $0x10] sm:$0xff]   ;;  %862 = vmatprep.subr.bf16.mxu1 %v1035_v0  ;;  %v910_v39 = vld [vmem:[%s1260_s8 + $0x8] sm:$0xff]   ;;  %v911_v40 = vld [vmem:[%s1260_s8] sm:$0xff]  }
 0x313   :  { %v328_v42 = vpop.xlane.xlu1 %327 }
 0x314   :  { %v337_v45 = vmax.f32 %v335_v41, 0.0  ;;  %v332_v47 = vmul.f32 0.0078125, %v328_v42  ;;  %v912_v41 = vld [vmem:[#allocation5 + $0x8] sm:$0xff]   ;;  %v913_v42 = vld [vmem:[#allocation5] sm:$0xff]  }
 0x315   :  { %863 = vmatpush3.bf16.msra.mxu1 %v909_v38 }
 0x316   :  { %v341_v48 = vadd.f32 1e-05, %v337_v45  ;;  %v336_v49 = vsub.f32 %v332_v47, %v334_v46  ;;  %864 = vmatprep.subr.bf16.mxu1 %v1035_v0 }
 0x318   :  { %922 = vrsqrt.f32 %v341_v48  ;;  %v338_v50 = vmax.f32 %v336_v49, 0.0 }
 0x319   :  { %865 = vmatpush3.bf16.msra.mxu1 %v910_v39 }
 0x31a   :  { %v342_v51 = vadd.f32 1e-05, %v338_v50  ;;  %866 = vmatprep.subr.bf16.mxu1 %v1035_v0 }
 0x31c   :  { %924 = vrsqrt.f32 %v342_v51 }
 0x31d   :  { %867 = vmatpush3.bf16.msra.mxu1 %v911_v40 }
 0x325   :  { %v923_v54 = vpop.eup %922 }
 0x326   :  { %v345_v56 = vmul.f32 %v923_v54, %v339_v53 }
 0x328   :  { %v351_v57 = vmul.f32 %v350_v52, %v345_v56 }
 0x329   :  { %v925_v59 = vpop.eup %924 }
 0x32a   :  { %v357_v60 = vadd.f32 %v356_v55, %v351_v57  ;;  %v346_v61 = vmul.f32 %v925_v59, %v340_v58 }
 0x32c   :  { %v352_v62 = vmul.f32 %v350_v52, %v346_v61  ;;  %v361_v63 = vmul.f32 0.044715, %v357_v60  ;;  %v359_v17 = vmul.f32 0.5, %v357_v60 }
 0x32e   :  { %v358_v1 = vadd.f32 %v356_v55, %v352_v62  ;;  %v363_v2 = vmul.f32 %v361_v63, %v357_v60  ;;  %v530_v62 = vrot.slane %v83_v23, %v1164_v44 }
 0x330   :  { %v362_v3 = vmul.f32 0.044715, %v358_v1  ;;  %v365_v4 = vmul.f32 %v363_v2, %v357_v60  ;;  %v360_v18 = vmul.f32 0.5, %v358_v1 }
 0x332   :  { %v364_v6 = vmul.f32 %v362_v3, %v358_v1  ;;  %v367_v9 = vadd.f32 %v365_v4, %v357_v60 }
 0x334   :  { %v366_v10 = vmul.f32 %v364_v6, %v358_v1  ;;  %v369_v11 = vmul.f32 0.7978846, %v367_v9 }
 0x336   :  { %v368_v12 = vadd.f32 %v366_v10, %v358_v1  ;;  %926 = vtanh.f32 %v369_v11 }
 0x338   :  { %v370_v13 = vmul.f32 0.7978846, %v368_v12 }
 0x33a   :  { %928 = vtanh.f32 %v370_v13 }
 0x343   :  { %v927_v14 = vpop.eup %926 }
 0x344   :  { %v373_v15 = vadd.f32 1.0, %v927_v14 }
 0x346   :  { %v375_v20 = vmul.f32 %v373_v15, %v359_v17 }
 0x347   :  { %v929_v16 = vpop.eup %928 }
 0x348   :  { %v374_v19 = vadd.f32 1.0, %v929_v16 }
 0x34a   :  { %v376_v21 = vmul.f32 %v374_v19, %v360_v18 }
 0x34c   :  { %v377_v22 = vpack.c.bf16 %v376_v21, %v375_v20 }
 0x34e   :  { %857 = vmatmul.mubr.bf16.vlgmr.msra.gmra.mxu0 %v377_v22 }
 0x34f   :  { %876 = vmatprep.mubr.msk.bf16.mxu0 %vm1036_vm0, %v1035_v0  ;;  %873 = vmatpush3.bf16.msra.mxu0 %v912_v41 }
 0x350   :  { %874 = vmatprep.subr.bf16.mxu0 %v1035_v0 }
 0x353   :  { %875 = vmatpush3.bf16.msra.mxu0 %v913_v42 }
 0x356   :  { %877 = vmatmul.mubr.msk.bf16.vlgmr.msra.gmra.mxu0 %vm105_vm1, %v1112_v5  ;;  %v524_v5 = vrot.slane %v83_v23, %v1161_v43 }
 0x40e   :  { %v480_v25 = vpop.f32.mrf.mxu0 }
 0x40f   :  { %v481_v26 = vadd.f32 %v480_v25, %v397_v24 }
 0x410   :  { %v858_v27 = vpop.f32.mrf.mxu0 }
 0x411   :  { %v488_v28 = vsel %vm487_vm2, %v481_v26, 0.0  ;;  %v494_v29 = vmul.f32 %v481_v26, %v481_v26 }
 0x412   :  { %489 = vadd.xlane.f32.xlu0 %v488_v28  ;;  %v483_v30 = vpop.f32.mrf.mxu0 }
 0x413   :  { %v484_v31 = vadd.f32 %v483_v30, %v397_v24  ;;  %v496_v33 = vsel %vm487_vm2, %v494_v29, 0.0  ;;  %v84_v30 = vld [vmem:[%s1261_s9] sm:$0xf]  ;;  %s1037_s9 = smov [#allocation8]  }
 0x414   :  { %v859_v32 = vpop.f32.mrf.mxu0  ;;  %s743_s29 = sshll.u32 %s1037_s9, 4  ;;  %s744_s29 = int_to_ptr.vmem [resolvable:$true] %s743_s29 }
 0x415   :  { %v491_v34 = vsel %vm487_vm2, %v484_v31, 0.0  ;;  %v495_v35 = vmul.f32 %v484_v31, %v484_v31  ;;  %s1002_s5 = scalar_lea.vmem %s744_s29, 256  ;;  %p1007_p2 = scmp.lt.s32.totalorder %s744_s29, %s744_s29 }
 0x416   :  { %497 = vadd.xlane.f32.xlu0 %v496_v33  ;;  %492 = vadd.xlane.f32.xlu1 %v491_v34  ;;  %v727_v40 = vpop.f32.mrf.mxu0  ;;  %p1003_p1 = scmp.ne.s32.totalorder %s744_s29, %s1002_s5  ;;  %p1008_p3 = scmp.lt.s32.totalorder %s1002_s5, %s1002_s5 }
 0x417   :  { %v499_v36 = vsel %vm487_vm2, %v495_v35, 0.0 }
 0x418   :  { %v878_v41 = vpop.f32.mrf.mxu0  ;;  %p1009_p4 = por %p1008_p3, %p1007_p2 }
 0x41a   :  { %500 = vadd.xlane.f32.xlu1 %v499_v36  ;;  %v730_v42 = vpop.f32.mrf.mxu0  ;;  %p1010_p5 = pnand %p1009_p4, %p1003_p1 }
 0x49b   :  { %v490_v45 = vpop.xlane.xlu0 %489 }
 0x49c   :  { %v503_v46 = vmul.f32 0.015625, %v490_v45  ;;  %v879_v45 = vpop.f32.mrf.mxu0 }
 0x49e   :  { %v507_v49 = vmul.f32 %v503_v46, %v503_v46  ;;  %v513_v60 = vsub.f32 %v481_v26, %v503_v46 }
 0x49f   :  { %v498_v47 = vpop.xlane.xlu0 %497  ;;  %v493_v48 = vpop.xlane.xlu1 %492 }
 0x4a0   :  { %v505_v50 = vmul.f32 0.015625, %v498_v47  ;;  %v504_v51 = vmul.f32 0.015625, %v493_v48 }
 0x4a2   :  { %v509_v52 = vsub.f32 %v505_v50, %v507_v49  ;;  %v508_v55 = vmul.f32 %v504_v51, %v504_v51  ;;  %v514_v2 = vsub.f32 %v484_v31, %v504_v51  ;;  %v563_v31 = vrot.slane %v84_v30, %v1161_v43 }
 0x4a3   :  { %v501_v53 = vpop.xlane.xlu1 %500 }
 0x4a4   :  { %v511_v54 = vmax.f32 %v509_v52, 0.0  ;;  %v506_v56 = vmul.f32 0.015625, %v501_v53 }
 0x4a6   :  { %v515_v57 = vadd.f32 1e-05, %v511_v54  ;;  %v510_v58 = vsub.f32 %v506_v56, %v508_v55 }
 0x4a8   :  { %930 = vrsqrt.f32 %v515_v57  ;;  %v512_v0 = vmax.f32 %v510_v58, 0.0 }
 0x4aa   :  { %v516_v59 = vadd.f32 1e-05, %v512_v0 }
 0x4ac   :  { %932 = vrsqrt.f32 %v516_v59 }
 0x4b5   :  { %v931_v61 = vpop.eup %930 }
 0x4b6   :  { %v519_v63 = vmul.f32 %v931_v61, %v513_v60  ;;  %v664_v61 = vrot.slane %v84_v30, %v1164_v44 }
 0x4b8   :  { %v525_v1 = vmul.f32 %v524_v5, %v519_v63 }
 0x4b9   :  { %v933_v3 = vpop.eup %932 }
 0x4ba   :  { %v531_v4 = vadd.f32 %v530_v62, %v525_v1  ;;  %v520_v6 = vmul.f32 %v933_v3, %v514_v2 }
 0x4bc   :  { %v526_v9 = vmul.f32 %v524_v5, %v520_v6  ;;  %v535_v10 = vmul.f32 0.044715, %v531_v4  ;;  %v533_v24 = vmul.f32 0.5, %v531_v4  ;;  %v669_v5 = vsub.s32 3, %v1119_v7 }
 0x4be   :  { %v532_v11 = vadd.f32 %v530_v62, %v526_v9  ;;  %v537_v12 = vmul.f32 %v535_v10, %v531_v4  ;;  %v680_v62 = vrot.slane %v84_v30, %v1122_v8  ;;  %v670_v2 = vrot.slane %v84_v30, %v669_v5 }
 0x4c0   :  { %v536_v13 = vmul.f32 0.044715, %v532_v11  ;;  %v539_v14 = vmul.f32 %v537_v12, %v531_v4  ;;  %v534_v25 = vmul.f32 0.5, %v532_v11  ;;  %v728_v6 = vadd.f32 %v727_v40, %v680_v62 }
 0x4c2   :  { %v538_v15 = vmul.f32 %v536_v13, %v532_v11  ;;  %v541_v16 = vadd.f32 %v539_v14, %v531_v4  ;;  %v731_v14 = vadd.f32 %v730_v42, %v680_v62 }
 0x4c4   :  { %v540_v17 = vmul.f32 %v538_v15, %v532_v11  ;;  %v543_v18 = vmul.f32 0.7978846, %v541_v16 }
 0x4c6   :  { %v542_v19 = vadd.f32 %v540_v17, %v532_v11  ;;  %934 = vtanh.f32 %v543_v18 }
 0x4c8   :  { %v544_v20 = vmul.f32 0.7978846, %v542_v19 }
 0x4ca   :  { %936 = vtanh.f32 %v544_v20 }
 0x4d3   :  { %v935_v21 = vpop.eup %934 }
 0x4d4   :  { %v547_v22 = vadd.f32 1.0, %v935_v21 }
 0x4d6   :  { %v549_v27 = vmul.f32 %v547_v22, %v533_v24 }
 0x4d7   :  { %v937_v23 = vpop.eup %936 }
 0x4d8   :  { %v548_v26 = vadd.f32 1.0, %v937_v23 }
 0x4da   :  { %v550_v28 = vmul.f32 %v548_v26, %v534_v25 }
 0x4dc   :  { %v551_v29 = vpack.c.bf16 %v550_v28, %v549_v27 }
 0x4de   :  { %869 = vmatmul.mubr.msk.bf16.vlgmr.msra.gmra.mxu1 %vm487_vm2, %v551_v29 }
 0x59e   :  { %v625_v32 = vpop.f32.mrf.mxu1 }
 0x59f   :  { %v626_v33 = vadd.f32 %v625_v32, %v563_v31 }
 0x5a0   :  { %v870_v34 = vpop.f32.mrf.mxu1 }
 0x5a1   :  { %632 = vadd.xlane.f32.xlu0 %v626_v33  ;;  %v636_v37 = vmul.f32 %v626_v33, %v626_v33 }
 0x5a2   :  { %v628_v35 = vpop.f32.mrf.mxu1 }
 0x5a3   :  { %v629_v36 = vadd.f32 %v628_v35, %v563_v31 }
 0x5a4   :  { %v871_v38 = vpop.f32.mrf.mxu1 }
 0x5a5   :  { %638 = vadd.xlane.f32.xlu0 %v636_v37  ;;  %634 = vadd.xlane.f32.xlu1 %v629_v36  ;;  %v637_v39 = vmul.f32 %v629_v36, %v629_v36 }
 0x5a9   :  { %640 = vadd.xlane.f32.xlu1 %v637_v39 }
 0x62a   :  { %v633_v46 = vpop.xlane.xlu0 %632 }
 0x62b   :  { %v643_v47 = vmul.f32 0.03125, %v633_v46 }
 0x62d   :  { %v647_v49 = vmul.f32 %v643_v47, %v643_v47  ;;  %v653_v60 = vsub.f32 %v626_v33, %v643_v47 }
 0x62e   :  { %v639_v48 = vpop.xlane.xlu0 %638  ;;  %v635_v43 = vpop.xlane.xlu1 %634 }
 0x62f   :  { %v645_v50 = vmul.f32 0.03125, %v639_v48  ;;  %v644_v51 = vmul.f32 0.03125, %v635_v43 }
 0x631   :  { %v649_v52 = vsub.f32 %v645_v50, %v647_v49  ;;  %v648_v55 = vmul.f32 %v644_v51, %v644_v51  ;;  %v654_v3 = vsub.f32 %v629_v36, %v644_v51 }
 0x632   :  { %v641_v53 = vpop.xlane.xlu1 %640 }
 0x633   :  { %v651_v54 = vmax.f32 %v649_v52, 0.0  ;;  %v646_v56 = vmul.f32 0.03125, %v641_v53 }
 0x635   :  { %v655_v57 = vadd.f32 1e-05, %v651_v54  ;;  %v650_v58 = vsub.f32 %v646_v56, %v648_v55 }
 0x637   :  { %938 = vrsqrt.f32 %v655_v57  ;;  %v652_v0 = vmax.f32 %v650_v58, 0.0 }
 0x639   :  { %v656_v59 = vadd.f32 1e-05, %v652_v0 }
 0x63b   :  { %940 = vrsqrt.f32 %v656_v59 }
 0x644   :  { %v939_v63 = vpop.eup %938 }
 0x645   :  { %v659_v1 = vmul.f32 %v939_v63, %v653_v60 }
 0x647   :  { %v665_v4 = vmul.f32 %v664_v61, %v659_v1 }
 0x648   :  { %v941_v9 = vpop.eup %940 }
 0x649   :  { %v671_v10 = vadd.f32 %v670_v2, %v665_v4  ;;  %v660_v11 = vmul.f32 %v941_v9, %v654_v3 }
 0x64b   :  { %v734_v12 = vadd.f32 %v728_v6, %v671_v10  ;;  %v666_v13 = vmul.f32 %v664_v61, %v660_v11 }
 0x64d   :  { %736 = vst [vmem:[#allocation8] sm:$0xff] %v734_v12  ;;  %v672_v7 = vadd.f32 %v670_v2, %v666_v13 }
 0x64f   :  { %v735_v15 = vadd.f32 %v731_v14, %v672_v7 }
 0x651   :  { %737 = vst [vmem:[#allocation8 + $0x8] sm:$0xff] %v735_v15 }
 0x652   :  { %1013 = shalt.err (!%p1010_p5)
}
 0x653   :  { %749 = dma.vmem_to_hbm [thread:$0]  %s744_s29, 256, %s1262_s10, [#allocation4], %s1032_s23, %s1032_s23, %s1033_s24  }
 0x654   :  { %1026 = dma.done.wait [#allocation4], 256  }
 0x655   :  { %1027 = vsyncadd [#allocation4], 4294967040 }
 0x656   :  { %753 = vsyncpa [#allocation3], 1 }
 0x657   :  { %754 = vsyncpa [#allocation6], 1 }
 0x658   :  { %755 = vsyncpa [#allocation4], 1 }

</bundles_post_ra>
